<compile_context>
chip_gen: v7x
topology: tpu7x:2x2x1
jax: 0.10.0
libtpu: 0.0.40
codegen_flags: <defaults>
</compile_context>

<pallas_src>
import functools
import math

import jax
import jax.numpy as jnp
from jax import lax
from jax.experimental import pallas as pl
from jax.experimental.pallas import tpu as pltpu

EPS = 1e-6                         # timm LayerNorm / LayerNorm2d eps used by ConvNeXt
_VMEM_LIMIT = 48 * 1024 * 1024     # leaves headroom on v7x (64 MiB physical VMEM per TC)


def _cparams(*sem):
    return pltpu.CompilerParams(dimension_semantics=sem,
                                vmem_limit_bytes=_VMEM_LIMIT)


def _row_tile(m, cap=512):
    """Largest tile <= cap that divides m and is sublane friendly (else m itself)."""
    for t in (512, 256, 128, 64, 32, 16, 8):
        if t <= cap and m % t == 0:
            return t
    return m


# ----------------------------- in-kernel helpers -----------------------------

def _ln(x, g, b):
    mu = jnp.mean(x, axis=-1, keepdims=True)
    xc = x - mu
    var = jnp.mean(xc * xc, axis=-1, keepdims=True)
    return xc * lax.rsqrt(var + EPS) * g + b


def _gelu(x):
    # exact (erf) GELU, matching torch.nn.GELU default
    return 0.5 * x * (1.0 + lax.erf(x * (1.0 / math.sqrt(2.0))))


# ----------------------------- fused ConvNeXt block -----------------------------
#
# Grid = (N, M // TM).  The whole flattened image (M = H*W rows) is DMA'd once per image
# (block index constant along the row-tile axis) and copied into a zero-padded VMEM
# scratch at t == 0; each step then computes TM output rows entirely in VMEM/vregs.

def _block_kernel(x_ref, dww_ref, dwb_ref, lng_ref, lnb_ref,
                  w1_ref, b1_ref, w2_ref, b2_ref, gamma_ref,
                  o_ref, xpad_ref, *, H, W, K, TM):
    C = o_ref.shape[2]
    M = H * W
    P = (K - 1) // 2
    PAD = P * W + P                     # halo size in flattened (row-major) space
    t = pl.program_id(1)

    # one-time (per image) fill of the zero-padded flattened scratch (no HBM pad copy)
    @pl.when(t == 0)
    def _():
        xpad_ref[...] = jnp.zeros(xpad_ref.shape, xpad_ref.dtype)
        xpad_ref[PAD:PAD + M, :] = x_ref[0]

    base = pl.multiple_of(t * TM, TM)

    # column-validity masks for the horizontal taps (left/right image borders)
    col = (lax.broadcasted_iota(jnp.int32, (TM, 1), 0) + base) % W
    maskf = []
    for dx in range(K):
        off = dx - P
        if off == 0:
            maskf.append(None)
        else:
            valid = jnp.logical_and(col + off >= 0, col + off < W)
            maskf.append(valid.astype(jnp.float32))

    # depthwise KxK conv on TM flattened rows: K slab loads, shifts as in-register slices
    acc = jnp.zeros((TM, C), jnp.float32) + dwb_ref[...]
    for dy in range(K):
        slab = xpad_ref[pl.ds(base + dy * W, TM + 2 * P), :]      # (TM + 2P, C)
        for dx in range(K):
            tap = slab[dx:dx + TM, :] * dww_ref[dy, dx, :]
            if maskf[dx] is not None:
                tap = tap * maskf[dx]
            acc = acc + tap

    # LayerNorm (channels-last) -> Linear(C,4C) -> GELU -> Linear(4C,C)   (MXU in bf16)
    xn = _ln(acc, lng_ref[...], lnb_ref[...])
    h = jnp.dot(xn.astype(jnp.bfloat16), w1_ref[...],
                preferred_element_type=jnp.float32) + b1_ref[...]
    h = _gelu(h)
    y = jnp.dot(h.astype(jnp.bfloat16), w2_ref[...],
                preferred_element_type=jnp.float32) + b2_ref[...]

    # layer-scale + residual (shortcut = block input, read from the resident x block)
    o_ref[0] = y * gamma_ref[...] + x_ref[0, pl.ds(base, TM), :]


def convnext_block(xf, blk, H, W):
    """Fused ConvNeXt block on flattened activations.  xf: (N, H*W, C) -> (N, H*W, C)."""
    N, M, C = xf.shape
    K = blk['dw_w'].shape[0]
    Ch = blk['w1'].shape[1]
    P = (K - 1) // 2
    TM = _row_tile(M)
    kern = functools.partial(_block_kernel, H=H, W=W, K=K, TM=TM)
    return pl.pallas_call(
        kern,
        out_shape=jax.ShapeDtypeStruct((N, M, C), jnp.float32),
        grid=(N, M // TM),
        in_specs=[pl.BlockSpec((1, M, C), lambda n, t: (n, 0, 0)),    # x (fetched once / image)
                  pl.BlockSpec((K, K, C), lambda n, t: (0, 0, 0)),    # dw weight (f32)
                  pl.BlockSpec((1, C), lambda n, t: (0, 0)),          # dw bias
                  pl.BlockSpec((1, C), lambda n, t: (0, 0)),          # LN gamma
                  pl.BlockSpec((1, C), lambda n, t: (0, 0)),          # LN beta
                  pl.BlockSpec((C, Ch), lambda n, t: (0, 0)),         # w1 (bf16)
                  pl.BlockSpec((1, Ch), lambda n, t: (0, 0)),         # b1
                  pl.BlockSpec((Ch, C), lambda n, t: (0, 0)),         # w2 (bf16)
                  pl.BlockSpec((1, C), lambda n, t: (0, 0)),          # b2
                  pl.BlockSpec((1, C), lambda n, t: (0, 0))],         # layer-scale gamma
        out_specs=pl.BlockSpec((1, TM, C), lambda n, t: (n, t, 0)),
        scratch_shapes=[pltpu.VMEM((M + 2 * (P * W + P), C), jnp.float32)],
        compiler_params=_cparams("parallel", "arbitrary"),
    )(xf,
      blk['dw_w'], blk['dw_b'].reshape(1, C),
      blk['ln_g'].reshape(1, C), blk['ln_b'].reshape(1, C),
      blk['w1'].astype(jnp.bfloat16), blk['b1'].reshape(1, Ch),
      blk['w2'].astype(jnp.bfloat16), blk['b2'].reshape(1, C),
      blk['gamma'].reshape(1, C))


# ----------------------------- fused stem: patch-matmul + LayerNorm2d -----------------------------

def _stem_kernel(x_ref, w_ref, b_ref, g_ref, bb_ref, o_ref):
    y = jnp.dot(x_ref[...].astype(jnp.bfloat16), w_ref[...],
                preferred_element_type=jnp.float32) + b_ref[...]
    o_ref[...] = _ln(y, g_ref[...], bb_ref[...])


def stem_conv_ln(rows, w, b, g, beta):
    """rows:(M, p*p*Cin) @ w + b, then per-row LayerNorm over the output channels."""
    M, Kd = rows.shape
    C = w.shape[1]
    tm = _row_tile(M)
    return pl.pallas_call(
        _stem_kernel,
        out_shape=jax.ShapeDtypeStruct((M, C), jnp.float32),
        grid=(M // tm,),
        in_specs=[pl.BlockSpec((tm, Kd), lambda i: (i, 0)),
                  pl.BlockSpec((Kd, C), lambda i: (0, 0)),
                  pl.BlockSpec((1, C), lambda i: (0, 0)),
                  pl.BlockSpec((1, C), lambda i: (0, 0)),
                  pl.BlockSpec((1, C), lambda i: (0, 0))],
        out_specs=pl.BlockSpec((tm, C), lambda i: (i, 0)),
        compiler_params=_cparams("parallel"),
    )(rows, w.astype(jnp.bfloat16), b.reshape(1, C), g.reshape(1, C), beta.reshape(1, C))


# ----------------------------- fused downsample: LayerNorm2d + kxk/sk conv -----------------------------
# LayerNorm2d commutes with patchify (it is per-pixel over C), so it becomes a group-wise
# LN on each C-sized chunk of the patchified row, fused with the conv-as-matmul.

def _downsample_kernel(x_ref, w_ref, b_ref, g_ref, bb_ref, o_ref, *, groups, cin):
    rows = x_ref[...]                                   # (tm, groups*cin) f32
    cout = w_ref.shape[2]
    acc = jnp.zeros((rows.shape[0], cout), jnp.float32) + b_ref[...]
    for gidx in range(groups):
        chunk = rows[:, gidx * cin:(gidx + 1) * cin]
        cn = _ln(chunk, g_ref[...], bb_ref[...])
        acc = acc + jnp.dot(cn.astype(jnp.bfloat16), w_ref[gidx],
                            preferred_element_type=jnp.float32)
    o_ref[...] = acc


def downsample_ln_conv(rows, w, b, g, beta, groups, cin):
    M = rows.shape[0]
    cout = w.shape[1]
    tm = _row_tile(M)
    kern = functools.partial(_downsample_kernel, groups=groups, cin=cin)
    return pl.pallas_call(
        kern,
        out_shape=jax.ShapeDtypeStruct((M, cout), jnp.float32),
        grid=(M // tm,),
        in_specs=[pl.BlockSpec((tm, groups * cin), lambda i: (i, 0)),
                  pl.BlockSpec((groups, cin, cout), lambda i: (0, 0, 0)),
                  pl.BlockSpec((1, cout), lambda i: (0, 0)),
                  pl.BlockSpec((1, cin), lambda i: (0, 0)),
                  pl.BlockSpec((1, cin), lambda i: (0, 0))],
        out_specs=pl.BlockSpec((tm, cout), lambda i: (i, 0)),
        compiler_params=_cparams("parallel"),
    )(rows, w.reshape(groups, cin, cout).astype(jnp.bfloat16),
      b.reshape(1, cout), g.reshape(1, cin), beta.reshape(1, cin))


# ----------------------------- fused head: avg-pool + LayerNorm + fc -----------------------------

def _head_kernel(x_ref, g_ref, b_ref, w_ref, fb_ref, o_ref):
    M = x_ref.shape[1]
    pooled = jnp.sum(x_ref[0], axis=0, keepdims=True) * (1.0 / M)     # (1, C)
    pooled = _ln(pooled, g_ref[...], b_ref[...])
    o_ref[0] = jnp.dot(pooled.astype(jnp.bfloat16), w_ref[...],
                       preferred_element_type=jnp.float32) + fb_ref[...]


def head_pool_ln_fc(xf, g, beta, fw, fb):
    """xf: (N, H*W, C) -> logits (N, num_classes)."""
    N, M, C = xf.shape
    NC = fw.shape[1]
    out = pl.pallas_call(
        _head_kernel,
        out_shape=jax.ShapeDtypeStruct((N, 1, NC), jnp.float32),
        grid=(N,),
        in_specs=[pl.BlockSpec((1, M, C), lambda n: (n, 0, 0)),
                  pl.BlockSpec((1, C), lambda n: (0, 0)),
                  pl.BlockSpec((1, C), lambda n: (0, 0)),
                  pl.BlockSpec((C, NC), lambda n: (0, 0)),
                  pl.BlockSpec((1, NC), lambda n: (0, 0))],
        out_specs=pl.BlockSpec((1, 1, NC), lambda n: (n, 0, 0)),
        compiler_params=_cparams("parallel"),
    )(xf, g.reshape(1, C), beta.reshape(1, C),
      fw.astype(jnp.bfloat16), fb.reshape(1, NC))
    return out.reshape(N, NC)


# ----------------------------- JAX glue -----------------------------

def patchify(x, p):
    """Non-overlapping pxp patches (== conv with kernel=stride=p, no padding).
    (N,H,W,C) -> (N*(H/p)*(W/p), p*p*C), flattened in (kh, kw, cin) order."""
    # TODO(synk): the patch gather is still an XLA reshape/transpose (not an in-kernel
    # strided DMA); it only runs once per stem/downsample on shrinking tensors.
    N, H, W, C = x.shape
    x = x.reshape(N, H // p, p, W // p, p, C)
    x = x.transpose(0, 1, 3, 2, 4, 5)
    return x.reshape(N * (H // p) * (W // p), p * p * C)


def trunc_normal(key, shape, std=0.02):
    return std * jax.random.truncated_normal(key, -2.0, 2.0, shape, jnp.float32)


def init_params(key, in_chans=3, dims=(16, 32, 64, 128), depths=(1, 1, 1, 1),
                num_classes=10, patch_size=4, kernel_size=7, mlp_ratio=4,
                ls_init_value=1e-6):
    """Deterministic synthetic weights with the same shapes/init style as _init_weights
    (trunc_normal std=0.02 for conv/linear weights, zero biases, unit LN affine)."""
    keys = iter(jax.random.split(key, 4 + 8 * sum(depths) + 8))
    params = {'patch_size': patch_size, 'kernel_size': kernel_size}

    params['stem'] = dict(
        w=trunc_normal(next(keys), (patch_size * patch_size * in_chans, dims[0])),
        b=jnp.zeros((dims[0],), jnp.float32),
        ln_g=jnp.ones((dims[0],), jnp.float32),
        ln_b=jnp.zeros((dims[0],), jnp.float32),
    )

    stages = []
    prev = dims[0]
    for i in range(4):
        out = dims[i]
        stride = 2 if i > 0 else 1          # timm ConvNeXt stage strides with a patch stem
        st = {}
        if prev != out or stride > 1:
            ds_ks = 2 if stride > 1 else 1
            st['downsample'] = dict(
                ln_g=jnp.ones((prev,), jnp.float32),
                ln_b=jnp.zeros((prev,), jnp.float32),
                w=trunc_normal(next(keys), (ds_ks * ds_ks * prev, out)),
                b=jnp.zeros((out,), jnp.float32),
                ks=ds_ks, stride=stride)
        else:
            st['downsample'] = None
        blocks = []
        for _ in range(depths[i]):
            hid = int(mlp_ratio * out)
            blocks.append(dict(
                dw_w=trunc_normal(next(keys), (kernel_size, kernel_size, out)),
                dw_b=jnp.zeros((out,), jnp.float32),
                ln_g=jnp.ones((out,), jnp.float32),
                ln_b=jnp.zeros((out,), jnp.float32),
                w1=trunc_normal(next(keys), (out, hid)),
                b1=jnp.zeros((hid,), jnp.float32),
                w2=trunc_normal(next(keys), (hid, out)),
                b2=jnp.zeros((out,), jnp.float32),
                gamma=jnp.full((out,), ls_init_value, jnp.float32),
            ))
        st['blocks'] = blocks
        stages.append(st)
        prev = out
    params['stages'] = stages

    params['head'] = dict(
        ln_g=jnp.ones((prev,), jnp.float32),
        ln_b=jnp.zeros((prev,), jnp.float32),
        fc_w=trunc_normal(next(keys), (prev, num_classes)),
        fc_b=jnp.zeros((num_classes,), jnp.float32),
    )
    return params


def convnext_forward(params, x_nchw):
    """Matches ConvNeXt.forward: returns (features NCHW, logits)."""
    x = jnp.transpose(x_nchw.astype(jnp.float32), (0, 2, 3, 1))   # -> NHWC
    N, H, W, _ = x.shape
    ps = params['patch_size']

    # ---- stem: patch conv (as matmul) + LayerNorm2d, fused ----
    sp = params['stem']
    Hc, Wc = H // ps, W // ps
    y = stem_conv_ln(patchify(x, ps), sp['w'], sp['b'], sp['ln_g'], sp['ln_b'])
    C = sp['w'].shape[1]
    x4 = y.reshape(N, Hc, Wc, C)

    # ---- stages ----
    for st in params['stages']:
        ds = st['downsample']
        if ds is not None:
            ks, s = ds['ks'], ds['stride']
            cin = x4.shape[3]
            rows = patchify(x4, ks)
            y = downsample_ln_conv(rows, ds['w'], ds['b'], ds['ln_g'], ds['ln_b'],
                                   groups=ks * ks, cin=cin)
            Hc, Wc = Hc // s, Wc // s
            C = ds['w'].shape[1]
            x4 = y.reshape(N, Hc, Wc, C)
        xf = x4.reshape(N, Hc * Wc, C)         # free (metadata) reshape; blocks stay flat
        for blk in st['blocks']:
            xf = convnext_block(xf, blk, Hc, Wc)
        x4 = xf.reshape(N, Hc, Wc, C)

    # norm_pre = Identity (head_norm_first=False)
    features_nchw = jnp.transpose(x4, (0, 3, 1, 2))

    # ---- head (NormMlpClassifierHead, hidden=None): pool -> LN -> fc, fused ----
    hp = params['head']
    logits = head_pool_ln_fc(x4.reshape(N, Hc * Wc, C),
                             hp['ln_g'], hp['ln_b'], hp['fc_w'], hp['fc_b'])
    # TODO(synk): drop_path / dropout omitted (rates are 0.0 by default -> Identity).
    return features_nchw, logits


if __name__ == "__main__":
    key = jax.random.PRNGKey(0)
    pkey, xkey = jax.random.split(key)
    params = init_params(pkey, in_chans=3, dims=(16, 32, 64, 128),
                         depths=(1, 1, 1, 1), num_classes=10,
                         patch_size=4, kernel_size=7)
    x = jax.random.normal(xkey, (2, 3, 64, 64), jnp.float32)      # NCHW, like PyTorch
    feats, logits = convnext_forward(params, x)
    jax.block_until_ready((feats, logits))
    assert feats.shape == (2, 128, 2, 2), feats.shape
    assert logits.shape == (2, 10), logits.shape
    assert bool(jnp.all(jnp.isfinite(feats))) and bool(jnp.all(jnp.isfinite(logits)))
    print("KERNEL_OK")
</pallas_src>

<mosaic_0001>
module attributes {stable_mosaic.version = 11 : i64} {
  func.func @_stem_kernel(%arg0: i32, %arg1: memref<512x48xf32, #tpu.memory_space<vmem>>, %arg2: memref<48x16xbf16, #tpu.memory_space<vmem>>, %arg3: memref<1x16xf32, #tpu.memory_space<vmem>>, %arg4: memref<1x16xf32, #tpu.memory_space<vmem>>, %arg5: memref<1x16xf32, #tpu.memory_space<vmem>>, %arg6: memref<512x16xf32, #tpu.memory_space<vmem>>) attributes {dimension_semantics = [#tpu.dimension_semantics<parallel>], iteration_bounds = array<i64: 1>, scalar_prefetch = 0 : i64, scratch_operands = 0 : i64, tpu.core_type = #tpu.core_type<tc>, window_params = [{transform_indices = @transform_0, window_bounds = array<i64: 512, 48>}, {pipeline_mode = #tpu.pipeline_mode<synchronous>, transform_indices = @transform_1, window_bounds = array<i64: 48, 16>}, {pipeline_mode = #tpu.pipeline_mode<synchronous>, transform_indices = @transform_2, window_bounds = array<i64: 1, 16>}, {pipeline_mode = #tpu.pipeline_mode<synchronous>, transform_indices = @transform_3, window_bounds = array<i64: 1, 16>}, {pipeline_mode = #tpu.pipeline_mode<synchronous>, transform_indices = @transform_4, window_bounds = array<i64: 1, 16>}, {transform_indices = @transform_5, window_bounds = array<i64: 512, 16>}]} {
    %c0 = arith.constant 0 : index
    %c0_0 = arith.constant 0 : index
    %0 = vector.load %arg1[%c0, %c0_0] : memref<512x48xf32, #tpu.memory_space<vmem>>, vector<512x48xf32>
    %1 = arith.truncf %0 : vector<512x48xf32> to vector<512x48xbf16>
    %c0_1 = arith.constant 0 : index
    %c0_2 = arith.constant 0 : index
    %2 = vector.load %arg2[%c0_1, %c0_2] : memref<48x16xbf16, #tpu.memory_space<vmem>>, vector<48x16xbf16>
    %cst = arith.constant dense<0.000000e+00> : vector<512x16xf32>
    %3 = tpu.matmul %1, %2, %cst {dimension_numbers = #tpu.dot_dimension_numbers<[1], [0], [0], [1], [0, 0, 1, 1], [], []>} : vector<512x48xbf16>, vector<48x16xbf16>, vector<512x16xf32> -> vector<512x16xf32>
    %c0_3 = arith.constant 0 : index
    %c0_4 = arith.constant 0 : index
    %4 = vector.load %arg3[%c0_3, %c0_4] : memref<1x16xf32, #tpu.memory_space<vmem>>, vector<1x16xf32>
    %5 = vector.broadcast %4 : vector<1x16xf32> to vector<512x16xf32>
    %6 = arith.addf %3, %5 : vector<512x16xf32>
    %c0_5 = arith.constant 0 : index
    %c0_6 = arith.constant 0 : index
    %7 = vector.load %arg4[%c0_5, %c0_6] : memref<1x16xf32, #tpu.memory_space<vmem>>, vector<1x16xf32>
    %c0_7 = arith.constant 0 : index
    %c0_8 = arith.constant 0 : index
    %8 = vector.load %arg5[%c0_7, %c0_8] : memref<1x16xf32, #tpu.memory_space<vmem>>, vector<1x16xf32>
    %cst_9 = arith.constant dense<0.000000e+00> : vector<512xf32>
    %9 = vector.multi_reduction <add>, %6, %cst_9 [1] : vector<512x16xf32> to vector<512xf32>
    %10 = vector.shape_cast %9 : vector<512xf32> to vector<512x1xf32>
    %cst_10 = arith.constant 1.600000e+01 : f32
    %11 = vector.broadcast %cst_10 : f32 to vector<512x1xf32>
    %12 = arith.divf %10, %11 : vector<512x1xf32>
    %13 = vector.broadcast %12 : vector<512x1xf32> to vector<512x16xf32>
    %14 = arith.subf %6, %13 : vector<512x16xf32>
    %15 = arith.mulf %14, %14 : vector<512x16xf32>
    %cst_11 = arith.constant dense<0.000000e+00> : vector<512xf32>
    %16 = vector.multi_reduction <add>, %15, %cst_11 [1] : vector<512x16xf32> to vector<512xf32>
    %17 = vector.shape_cast %16 : vector<512xf32> to vector<512x1xf32>
    %cst_12 = arith.constant 1.600000e+01 : f32
    %18 = vector.broadcast %cst_12 : f32 to vector<512x1xf32>
    %19 = arith.divf %17, %18 : vector<512x1xf32>
    %cst_13 = arith.constant 9.99999997E-7 : f32
    %20 = vector.broadcast %cst_13 : f32 to vector<512x1xf32>
    %21 = arith.addf %19, %20 : vector<512x1xf32>
    %22 = math.rsqrt %21 : vector<512x1xf32>
    %23 = vector.broadcast %22 : vector<512x1xf32> to vector<512x16xf32>
    %24 = arith.mulf %14, %23 : vector<512x16xf32>
    %25 = vector.broadcast %7 : vector<1x16xf32> to vector<512x16xf32>
    %26 = arith.mulf %24, %25 : vector<512x16xf32>
    %27 = vector.broadcast %8 : vector<1x16xf32> to vector<512x16xf32>
    %28 = arith.addf %26, %27 : vector<512x16xf32>
    %c0_14 = arith.constant 0 : index
    %c0_15 = arith.constant 0 : index
    %29 = vector.load %arg6[%c0_14, %c0_15] : memref<512x16xf32, #tpu.memory_space<vmem>>, vector<512x16xf32>
    tpu.vector_store %arg6[%c0_14, %c0_15], %28 {strides = array<i32>} : memref<512x16xf32, #tpu.memory_space<vmem>>, vector<512x16xf32>,
    return
  }
  func.func @transform_0(%arg0: i32) -> (i32, i32) {
    %c0_i32 = arith.constant 0 : i32
    %c0_i32_0 = arith.constant 0 : i32
    return %arg0, %c0_i32 : i32, i32
  }
  func.func @transform_1(%arg0: i32) -> (i32, i32) {
    %c0_i32 = arith.constant 0 : i32
    %c0_i32_0 = arith.constant 0 : i32
    %c0_i32_1 = arith.constant 0 : i32
    return %c0_i32, %c0_i32_0 : i32, i32
  }
  func.func @transform_2(%arg0: i32) -> (i32, i32) {
    %c0_i32 = arith.constant 0 : i32
    %c0_i32_0 = arith.constant 0 : i32
    %c0_i32_1 = arith.constant 0 : i32
    return %c0_i32, %c0_i32_0 : i32, i32
  }
  func.func @transform_3(%arg0: i32) -> (i32, i32) {
    %c0_i32 = arith.constant 0 : i32
    %c0_i32_0 = arith.constant 0 : i32
    %c0_i32_1 = arith.constant 0 : i32
    return %c0_i32, %c0_i32_0 : i32, i32
  }
  func.func @transform_4(%arg0: i32) -> (i32, i32) {
    %c0_i32 = arith.constant 0 : i32
    %c0_i32_0 = arith.constant 0 : i32
    %c0_i32_1 = arith.constant 0 : i32
    return %c0_i32, %c0_i32_0 : i32, i32
  }
  func.func @transform_5(%arg0: i32) -> (i32, i32) {
    %c0_i32 = arith.constant 0 : i32
    %c0_i32_0 = arith.constant 0 : i32
    return %arg0, %c0_i32 : i32, i32
  }
}

</mosaic_0001>

<bundles_post_ra>
// kernel: tpu_custom_call.1
= control target key start
LH: loop header
LB: loop body
LE: loop exit
PB: predicated region body
PF: predicated region fallthrough
CT: control target
= control target key end

     0   :  { %vm148_vm0 = vcmask 392192   ;;  %vm536_vm1 = vcmask 130048   ;;  %s3312_s1 = inlined_call_operand.vmem [shape: bf16[48,16], index: 1, kind: input, shape index: {}]   ;;  %s3313_s0 = inlined_call_operand.vmem [shape: f32[512,48], index: 0, kind: input, shape index: {}]   ;;  %s3314_s2 = inlined_call_operand.vmem [shape: f32[1,16], index: 2, kind: input, shape index: {}]   ;;  %s3315_s3 = inlined_call_operand.vmem [shape: f32[1,16], index: 3, kind: input, shape index: {}]   ;;  %s3316_s4 = inlined_call_operand.vmem [shape: f32[1,16], index: 4, kind: input, shape index: {}]   ;;  %s3317_s5 = inlined_call_operand.vmem [shape: f32[512,16], index: 5, kind: output, shape index: {}]  }
   0x1   :  { %v1727_v0 = vld [vmem:[%s3312_s1] sm:$0xff]   ;;  %v1728_v1 = vld [vmem:[%s3312_s1 + $0x8] sm:$0xff]   ;;  %v1729_v5 = vld [vmem:[%s3312_s1 + $0x10] sm:$0xff]  }
   0x2   :  { %1651 = vmatprep.subr.bf16.mxu0 %v1727_v0  ;;  %1721 = vmatprep.subr.bf16.mxu1 %v1727_v0  ;;  %v21_v2 = vld [vmem:[%s3313_s0] sm:$0xff]  ;;  %v22_v3 = vld [vmem:[%s3313_s0 + $0x8] sm:$0xff]  ;;  %v23_v9 = vld [vmem:[%s3313_s0 + $0x10] sm:$0xff] }
   0x3   :  { %1652 = vmatpush3.bf16.msra.mxu0 %v1727_v0  ;;  %1724 = vmatpush3.bf16.msra.mxu1 %v1727_v0  ;;  %v53_v4 = vld [vmem:[%s3313_s0 + $0x100] sm:$0xff]  ;;  %v85_v6 = vpack.c.bf16 %v22_v3, %v21_v2  ;;  %v54_v7 = vld [vmem:[%s3313_s0 + $0x108] sm:$0xff]  ;;  %v24_v10 = vld [vmem:[%s3313_s0 + $0x18] sm:$0xff] }
   0x4   :  { %1653 = vmatprep.subr.bf16.mxu0 %v1728_v1  ;;  %1722 = vmatprep.subr.bf16.mxu1 %v1728_v1  ;;  %v101_v8 = vpack.c.bf16 %v54_v7, %v53_v4  ;;  %v55_v11 = vld [vmem:[%s3313_s0 + $0x110] sm:$0xff]  ;;  %v56_v12 = vld [vmem:[%s3313_s0 + $0x118] sm:$0xff]  ;;  %v25_v13 = vld [vmem:[%s3313_s0 + $0x20] sm:$0xff]  ;;  %v86_v17 = vpack.c.bf16 %v24_v10, %v23_v9 }
   0x5   :  { %1657 = vmatprep.mubr.msk.bf16.mxu0 %vm148_vm0, %v85_v6  ;;  %v26_v14 = vld [vmem:[%s3313_s0 + $0x28] sm:$0xff]  ;;  %v57_v15 = vld [vmem:[%s3313_s0 + $0x120] sm:$0xff]  ;;  %v102_v18 = vpack.c.bf16 %v56_v12, %v55_v11  ;;  %v27_v21 = vld [vmem:[%s3313_s0 + $0x30] sm:$0xff] }
   0x6   :  { %v58_v16 = vld [vmem:[%s3313_s0 + $0x128] sm:$0xff]  ;;  %1689 = vmatprep.mubr.msk.bf16.mxu1 %vm148_vm0, %v101_v8  ;;  %v87_v19 = vpack.c.bf16 %v26_v14, %v25_v13  ;;  %v28_v22 = vld [vmem:[%s3313_s0 + $0x38] sm:$0xff]  ;;  %v59_v23 = vld [vmem:[%s3313_s0 + $0x130] sm:$0xff] }
   0x7   :  { %1654 = vmatpush3.bf16.msra.mxu0 %v1728_v1  ;;  %1725 = vmatpush3.bf16.msra.mxu1 %v1728_v1  ;;  %v103_v20 = vpack.c.bf16 %v58_v16, %v57_v15  ;;  %v60_v24 = vld [vmem:[%s3313_s0 + $0x138] sm:$0xff]  ;;  %v29_v25 = vld [vmem:[%s3313_s0 + $0x40] sm:$0xff]  ;;  %v30_v26 = vld [vmem:[%s3313_s0 + $0x48] sm:$0xff]  ;;  %v88_v29 = vpack.c.bf16 %v28_v22, %v27_v21 }
   0x8   :  { %1655 = vmatprep.subr.bf16.mxu0 %v1729_v5  ;;  %1723 = vmatprep.subr.bf16.mxu1 %v1729_v5  ;;  %v61_v27 = vld [vmem:[%s3313_s0 + $0x140] sm:$0xff]  ;;  %v62_v28 = vld [vmem:[%s3313_s0 + $0x148] sm:$0xff]  ;;  %v104_v30 = vpack.c.bf16 %v60_v24, %v59_v23  ;;  %v89_v31 = vpack.c.bf16 %v30_v26, %v29_v25  ;;  %v31_v33 = vld [vmem:[%s3313_s0 + $0x50] sm:$0xff] }
   0x9   :  { %v105_v32 = vpack.c.bf16 %v62_v28, %v61_v27  ;;  %v32_v34 = vld [vmem:[%s3313_s0 + $0x58] sm:$0xff]  ;;  %v63_v35 = vld [vmem:[%s3313_s0 + $0x150] sm:$0xff]  ;;  %v33_v37 = vld [vmem:[%s3313_s0 + $0x60] sm:$0xff] }
   0xa   :  { %v64_v36 = vld [vmem:[%s3313_s0 + $0x158] sm:$0xff]  ;;  %v34_v38 = vld [vmem:[%s3313_s0 + $0x68] sm:$0xff]  ;;  %v65_v39 = vld [vmem:[%s3313_s0 + $0x160] sm:$0xff]  ;;  %v90_v41 = vpack.c.bf16 %v32_v34, %v31_v33 }
   0xb   :  { %1656 = vmatpush3.bf16.msra.mxu0 %v1729_v5  ;;  %1726 = vmatpush3.bf16.msra.mxu1 %v1729_v5  ;;  %v66_v40 = vld [vmem:[%s3313_s0 + $0x168] sm:$0xff]  ;;  %v106_v42 = vpack.c.bf16 %v64_v36, %v63_v35  ;;  %v91_v43 = vpack.c.bf16 %v34_v38, %v33_v37  ;;  %v35_v45 = vld [vmem:[%s3313_s0 + $0x70] sm:$0xff]  ;;  %v36_v46 = vld [vmem:[%s3313_s0 + $0x78] sm:$0xff] }
   0xc   :  { %v107_v44 = vpack.c.bf16 %v66_v40, %v65_v39  ;;  %v67_v47 = vld [vmem:[%s3313_s0 + $0x170] sm:$0xff]  ;;  %v68_v48 = vld [vmem:[%s3313_s0 + $0x178] sm:$0xff]  ;;  %v37_v49 = vld [vmem:[%s3313_s0 + $0x80] sm:$0xff]  ;;  %v92_v53 = vpack.c.bf16 %v36_v46, %v35_v45 }
   0xd   :  { %v38_v50 = vld [vmem:[%s3313_s0 + $0x88] sm:$0xff]  ;;  %v69_v51 = vld [vmem:[%s3313_s0 + $0x180] sm:$0xff]  ;;  %v108_v54 = vpack.c.bf16 %v68_v48, %v67_v47  ;;  %v39_v57 = vld [vmem:[%s3313_s0 + $0x90] sm:$0xff] }
   0xe   :  { %1658 = vmatmul.mubr.msk.bf16.vlgmr.msra.gmra.mrb[0].mxu0 %vm148_vm0, %v86_v17  ;;  %1690 = vmatmul.mubr.msk.bf16.vlgmr.msra.gmra.mrb[0].mxu1 %vm148_vm0, %v102_v18  ;;  %v70_v52 = vld [vmem:[%s3313_s0 + $0x188] sm:$0xff]  ;;  %v93_v55 = vpack.c.bf16 %v38_v50, %v37_v49  ;;  %v40_v58 = vld [vmem:[%s3313_s0 + $0x98] sm:$0xff]  ;;  %v71_v59 = vld [vmem:[%s3313_s0 + $0x190] sm:$0xff] }
   0xf   :  { %1661 = vmatprep.mubr.msk.bf16.mxu0 %vm148_vm0, %v87_v19  ;;  %1693 = vmatprep.mubr.msk.bf16.mxu1 %vm148_vm0, %v103_v20  ;;  %v109_v56 = vpack.c.bf16 %v70_v52, %v69_v51  ;;  %v72_v60 = vld [vmem:[%s3313_s0 + $0x198] sm:$0xff]  ;;  %v41_v61 = vld [vmem:[%s3313_s0 + $0xa0] sm:$0xff]  ;;  %v42_v62 = vld [vmem:[%s3313_s0 + $0xa8] sm:$0xff]  ;;  %v94_v1 = vpack.c.bf16 %v40_v58, %v39_v57 }
  0x10   :  { %v73_v63 = vld [vmem:[%s3313_s0 + $0x1a0] sm:$0xff]  ;;  %v74_v0 = vld [vmem:[%s3313_s0 + $0x1a8] sm:$0xff]  ;;  %v110_v2 = vpack.c.bf16 %v72_v60, %v71_v59  ;;  %v95_v3 = vpack.c.bf16 %v42_v62, %v41_v61  ;;  %v43_v5 = vld [vmem:[%s3313_s0 + $0xb0] sm:$0xff] }
  0x11   :  { %v111_v4 = vpack.c.bf16 %v74_v0, %v73_v63  ;;  %v44_v6 = vld [vmem:[%s3313_s0 + $0xb8] sm:$0xff]  ;;  %v75_v7 = vld [vmem:[%s3313_s0 + $0x1b0] sm:$0xff]  ;;  %v45_v9 = vld [vmem:[%s3313_s0 + $0xc0] sm:$0xff] }
  0x12   :  { %v76_v8 = vld [vmem:[%s3313_s0 + $0x1b8] sm:$0xff]  ;;  %v46_v10 = vld [vmem:[%s3313_s0 + $0xc8] sm:$0xff]  ;;  %v77_v11 = vld [vmem:[%s3313_s0 + $0x1c0] sm:$0xff]  ;;  %v96_v13 = vpack.c.bf16 %v44_v6, %v43_v5 }
  0x13   :  { %v78_v12 = vld [vmem:[%s3313_s0 + $0x1c8] sm:$0xff]  ;;  %v112_v14 = vpack.c.bf16 %v76_v8, %v75_v7  ;;  %v97_v15 = vpack.c.bf16 %v46_v10, %v45_v9  ;;  %v47_v17 = vld [vmem:[%s3313_s0 + $0xd0] sm:$0xff]  ;;  %v48_v18 = vld [vmem:[%s3313_s0 + $0xd8] sm:$0xff] }
  0x14   :  { %v113_v16 = vpack.c.bf16 %v78_v12, %v77_v11  ;;  %v79_v19 = vld [vmem:[%s3313_s0 + $0x1d0] sm:$0xff]  ;;  %v80_v20 = vld [vmem:[%s3313_s0 + $0x1d8] sm:$0xff]  ;;  %v49_v21 = vld [vmem:[%s3313_s0 + $0xe0] sm:$0xff]  ;;  %v98_v25 = vpack.c.bf16 %v48_v18, %v47_v17 }
  0x15   :  { %v50_v22 = vld [vmem:[%s3313_s0 + $0xe8] sm:$0xff]  ;;  %v81_v23 = vld [vmem:[%s3313_s0 + $0x1e0] sm:$0xff]  ;;  %v114_v26 = vpack.c.bf16 %v80_v20, %v79_v19 }
  0x16   :  { %1662 = vmatmul.mubr.msk.bf16.gmra.mrb[4].mxu0 %vm148_vm0, %v88_v29  ;;  %1694 = vmatmul.mubr.msk.bf16.gmra.mrb[4].mxu1 %vm148_vm0, %v104_v30  ;;  %v82_v24 = vld [vmem:[%s3313_s0 + $0x1e8] sm:$0xff]  ;;  %v99_v27 = vpack.c.bf16 %v50_v22, %v49_v21  ;;  %v51_v29 = vld [vmem:[%s3313_s0 + $0xf0] sm:$0xff]  ;;  %v52_v30 = vld [vmem:[%s3313_s0 + $0xf8] sm:$0xff] }
  0x17   :  { %1665 = vmatprep.mubr.msk.bf16.mxu0 %vm148_vm0, %v89_v31  ;;  %1697 = vmatprep.mubr.msk.bf16.mxu1 %vm148_vm0, %v105_v32  ;;  %v115_v28 = vpack.c.bf16 %v82_v24, %v81_v23  ;;  %v83_v31 = vld [vmem:[%s3313_s0 + $0x1f0] sm:$0xff]  ;;  %v84_v32 = vld [vmem:[%s3313_s0 + $0x1f8] sm:$0xff]  ;;  %v100_v33 = vpack.c.bf16 %v52_v30, %v51_v29  ;;  %v2126_v35 = vld [vmem:[%s3314_s2] ss:$0 sm:$0xff] }
  0x18   :  { %v116_v34 = vpack.c.bf16 %v84_v32, %v83_v31 }
  0x1e   :  { %1666 = vmatmul.mubr.msk.bf16.gmra.mrb[8].mxu0 %vm148_vm0, %v90_v41  ;;  %1698 = vmatmul.mubr.msk.bf16.gmra.mrb[8].mxu1 %vm148_vm0, %v106_v42 }
  0x1f   :  { %1669 = vmatprep.mubr.msk.bf16.mxu0 %vm148_vm0, %v91_v43  ;;  %1701 = vmatprep.mubr.msk.bf16.mxu1 %vm148_vm0, %v107_v44 }
  0x26   :  { %1670 = vmatmul.mubr.msk.bf16.gmra.mrb[12].mxu0 %vm148_vm0, %v92_v53  ;;  %1702 = vmatmul.mubr.msk.bf16.gmra.mrb[12].mxu1 %vm148_vm0, %v108_v54 }
  0x27   :  { %1673 = vmatprep.mubr.msk.bf16.mxu0 %vm148_vm0, %v93_v55  ;;  %1705 = vmatprep.mubr.msk.bf16.mxu1 %vm148_vm0, %v109_v56 }
  0x2e   :  { %1674 = vmatmul.mubr.msk.bf16.gmra.mrb[16].mxu0 %vm148_vm0, %v94_v1  ;;  %1706 = vmatmul.mubr.msk.bf16.gmra.mrb[16].mxu1 %vm148_vm0, %v110_v2 }
  0x2f   :  { %1677 = vmatprep.mubr.msk.bf16.mxu0 %vm148_vm0, %v95_v3  ;;  %1709 = vmatprep.mubr.msk.bf16.mxu1 %vm148_vm0, %v111_v4 }
  0x36   :  { %1678 = vmatmul.mubr.msk.bf16.gmra.mrb[20].mxu0 %vm148_vm0, %v96_v13  ;;  %1710 = vmatmul.mubr.msk.bf16.gmra.mrb[20].mxu1 %vm148_vm0, %v112_v14 }
  0x37   :  { %1681 = vmatprep.mubr.msk.bf16.mxu0 %vm148_vm0, %v97_v15  ;;  %1713 = vmatprep.mubr.msk.bf16.mxu1 %vm148_vm0, %v113_v16 }
  0x3e   :  { %1682 = vmatmul.mubr.msk.bf16.gmra.mrb[24].mxu0 %vm148_vm0, %v98_v25  ;;  %1714 = vmatmul.mubr.msk.bf16.gmra.mrb[24].mxu1 %vm148_vm0, %v114_v26 }
  0x3f   :  { %1685 = vmatprep.mubr.msk.bf16.mxu0 %vm148_vm0, %v99_v27  ;;  %1717 = vmatprep.mubr.msk.bf16.mxu1 %vm148_vm0, %v115_v28 }
  0x46   :  { %1686 = vmatmul.mubr.msk.bf16.gmra.mrb[28].mxu0 %vm148_vm0, %v100_v33  ;;  %1718 = vmatmul.mubr.msk.bf16.gmra.mrb[28].mxu1 %vm148_vm0, %v116_v34 }
  0xe1   :  { %v1659_v36 = vpop.f32.mrb[0].mxu0  ;;  %v1691_v37 = vpop.f32.mrb[0].mxu1 }
  0xe2   :  { %v2129_v38 = vadd.f32 %v1659_v36, %v2126_v35  ;;  %v2132_v39 = vadd.f32 %v1691_v37, %v2126_v35  ;;  %v279_v40 = vpop.f32.mrb[1].mxu0  ;;  %v407_v41 = vpop.f32.mrb[1].mxu1 }
  0xe3   :  { %v1660_v42 = vpop.f32.mrb[2].mxu0  ;;  %v1692_v43 = vpop.f32.mrb[2].mxu1  ;;  %v2135_v44 = vadd.f32 %v2126_v35, %v279_v40  ;;  %v2145_v50 = vadd.f32 %v2126_v35, %v407_v41 }
  0xe4   :  { %v2138_v45 = vadd.f32 %v1660_v42, %v2126_v35  ;;  %v282_v46 = vpop.f32.mrb[3].mxu0  ;;  %v410_v47 = vpop.f32.mrb[3].mxu1  ;;  %v639_v48 = vsel %vm536_vm1, %v2132_v39, 0.0  ;;  %v543_v49 = vsel %vm536_vm1, %v2129_v38, 0.0  ;;  %v2148_v51 = vadd.f32 %v1692_v43, %v2126_v35 }
  0xe5   :  { %640 = vadd.xlane.f32.xlu0 %v639_v48  ;;  %544 = vadd.xlane.f32.xlu1 %v543_v49  ;;  %v537_v53 = vsel %vm536_vm1, %v2135_v44, 0.0  ;;  %v2155_v60 = vadd.f32 %v2126_v35, %v282_v46  ;;  %v2158_v61 = vadd.f32 %v2126_v35, %v410_v47  ;;  %v633_v63 = vsel %vm536_vm1, %v2145_v50, 0.0 }
  0xe6   :  { %v546_v52 = vsel %vm536_vm1, %v2138_v45, 0.0  ;;  %v642_v62 = vsel %vm536_vm1, %v2148_v51, 0.0 }
  0xe7   :  { %v636_v4 = vsel %vm536_vm1, %v2158_v61, 0.0  ;;  %v540_v5 = vsel %vm536_vm1, %v2155_v60, 0.0 }
  0xe9   :  { %547 = vadd.xlane.f32.xlu1 %v546_v52  ;;  %538 = vadd.xlane.f32.xlu0 %v537_v53  ;;  %v1663_v54 = vpop.f32.mrb[4].mxu0  ;;  %v1695_v55 = vpop.f32.mrb[4].mxu1 }
  0xea   :  { %v295_v56 = vpop.f32.mrb[5].mxu0  ;;  %v423_v57 = vpop.f32.mrb[5].mxu1  ;;  %v2165_v2 = vadd.f32 %v1663_v54, %v2126_v35  ;;  %v2177_v12 = vadd.f32 %v1695_v55, %v2126_v35 }
  0xeb   :  { %v1664_v58 = vpop.f32.mrb[6].mxu0  ;;  %v1696_v59 = vpop.f32.mrb[6].mxu1  ;;  %v2189_v18 = vadd.f32 %v2126_v35, %v295_v56  ;;  %v2211_v28 = vadd.f32 %v2126_v35, %v423_v57 }
  0xec   :  { %v298_v0 = vpop.f32.mrb[7].mxu0  ;;  %v426_v1 = vpop.f32.mrb[7].mxu1  ;;  %v2168_v3 = vadd.f32 %v1664_v58, %v2126_v35  ;;  %v2180_v13 = vadd.f32 %v1696_v59, %v2126_v35  ;;  %v555_v15 = vsel %vm536_vm1, %v2165_v2, 0.0  ;;  %v651_v21 = vsel %vm536_vm1, %v2177_v12, 0.0 }
  0xed   :  { %643 = vadd.xlane.f32.xlu1 %v642_v62  ;;  %634 = vadd.xlane.f32.xlu0 %v633_v63  ;;  %v2192_v19 = vadd.f32 %v2126_v35, %v298_v0  ;;  %v2214_v29 = vadd.f32 %v2126_v35, %v426_v1  ;;  %v549_v31 = vsel %vm536_vm1, %v2189_v18, 0.0  ;;  %v645_v40 = vsel %vm536_vm1, %v2211_v28, 0.0 }
  0xee   :  { %v558_v14 = vsel %vm536_vm1, %v2168_v3, 0.0  ;;  %v654_v20 = vsel %vm536_vm1, %v2180_v13, 0.0 }
  0xef   :  { %v552_v30 = vsel %vm536_vm1, %v2192_v19, 0.0  ;;  %v648_v37 = vsel %vm536_vm1, %v2214_v29, 0.0 }
  0xf1   :  { %637 = vadd.xlane.f32.xlu1 %v636_v4  ;;  %541 = vadd.xlane.f32.xlu0 %v540_v5  ;;  %v1667_v6 = vpop.f32.mrb[8].mxu0  ;;  %v1699_v7 = vpop.f32.mrb[8].mxu1 }
  0xf2   :  { %v311_v8 = vpop.f32.mrb[9].mxu0  ;;  %v2174_v9 = vpop.f32.mrb[9].mxu1  ;;  %v2225_v34 = vadd.f32 %v1667_v6, %v2126_v35  ;;  %v2241_v49 = vadd.f32 %v1699_v7, %v2126_v35 }
  0xf3   :  { %v1668_v10 = vpop.f32.mrb[10].mxu0  ;;  %v1700_v11 = vpop.f32.mrb[10].mxu1  ;;  %v2269_v5 = vadd.f32 %v2126_v35, %v311_v8 }
  0xf4   :  { %v314_v16 = vpop.f32.mrb[11].mxu0  ;;  %v2186_v17 = vpop.f32.mrb[11].mxu1  ;;  %v2228_v36 = vadd.f32 %v1668_v10, %v2126_v35  ;;  %v2244_v52 = vadd.f32 %v1700_v11, %v2126_v35  ;;  %v567_v58 = vsel %vm536_vm1, %v2225_v34, 0.0  ;;  %v663_v10 = vsel %vm536_vm1, %v2241_v49, 0.0 }
  0xf5   :  { %559 = vadd.xlane.f32.xlu1 %v558_v14  ;;  %556 = vadd.xlane.f32.xlu0 %v555_v15  ;;  %3351 = vst [vmem:[#allocation2_spill] sm:$0xff] %v2269_v5  ;;  %v2272_v6 = vadd.f32 %v2126_v35, %v314_v16  ;;  %v2286_v16 = vadd.f32 %v2126_v35, %v2174_v9 }
  0xf6   :  { %v570_v57 = vsel %vm536_vm1, %v2228_v36, 0.0  ;;  %v666_v7 = vsel %vm536_vm1, %v2244_v52, 0.0 }
  0xf7   :  { %3352 = vst [vmem:[#allocation3_spill] sm:$0xff] %v2286_v16 }
  0xf9   :  { %655 = vadd.xlane.f32.xlu1 %v654_v20  ;;  %652 = vadd.xlane.f32.xlu0 %v651_v21  ;;  %v2198_v22 = vpop.f32.mrb[12].mxu0  ;;  %v2200_v23 = vpop.f32.mrb[12].mxu1 }
  0xfa   :  { %v2202_v24 = vpop.f32.mrb[13].mxu0  ;;  %v2204_v25 = vpop.f32.mrb[13].mxu1 }
  0xfb   :  { %v2206_v26 = vpop.f32.mrb[14].mxu0  ;;  %v2208_v27 = vpop.f32.mrb[14].mxu1 }
  0xfc   :  { %v2220_v32 = vpop.f32.mrb[15].mxu0  ;;  %v2222_v33 = vpop.f32.mrb[15].mxu1 }
  0xfd   :  { %553 = vadd.xlane.f32.xlu1 %v552_v30  ;;  %550 = vadd.xlane.f32.xlu0 %v549_v31  ;;  %v2290_v30 = vadd.f32 %v2126_v35, %v2186_v17 }
  0xff   :  { %3353 = vst [vmem:[#allocation4_spill] sm:$0xff] %v2290_v30 }
 0x101   :  { %649 = vadd.xlane.f32.xlu1 %v648_v37  ;;  %646 = vadd.xlane.f32.xlu0 %v645_v40  ;;  %v1675_v41 = vpop.f32.mrb[16].mxu0  ;;  %v1707_v42 = vpop.f32.mrb[16].mxu1 }
 0x102   :  { %v2235_v43 = vadd.f32 %v1675_v41, %v2126_v35  ;;  %v343_v46 = vpop.f32.mrb[17].mxu0  ;;  %v2238_v47 = vadd.f32 %v1707_v42, %v2126_v35  ;;  %v471_v48 = vpop.f32.mrb[17].mxu1  ;;  %v564_v42 = vsel %vm536_vm1, %v2272_v6, 0.0 }
 0x103   :  { %v2247_v53 = vadd.f32 %v2126_v35, %v343_v46  ;;  %v1676_v54 = vpop.f32.mrb[18].mxu0  ;;  %v2250_v55 = vadd.f32 %v2126_v35, %v471_v48  ;;  %v1708_v56 = vpop.f32.mrb[18].mxu1  ;;  %v561_v46 = vsel %vm536_vm1, %v2269_v5, 0.0 }
 0x104   :  { %v2257_v59 = vadd.f32 %v1676_v54, %v2126_v35  ;;  %v346_v62 = vpop.f32.mrb[19].mxu0  ;;  %v2260_v63 = vadd.f32 %v1708_v56, %v2126_v35  ;;  %v474_v0 = vpop.f32.mrb[19].mxu1 }
 0x105   :  { %571 = vadd.xlane.f32.xlu1 %v570_v57  ;;  %568 = vadd.xlane.f32.xlu0 %v567_v58  ;;  %v2263_v1 = vadd.f32 %v2126_v35, %v346_v62  ;;  %v2266_v4 = vadd.f32 %v2126_v35, %v474_v0  ;;  %v2316_v58 = vadd.f32 %v2198_v22, %v2126_v35  ;;  %v660_v0 = vsel %vm536_vm1, %v2290_v30, 0.0 }
 0x106   :  { %v2320_v62 = vadd.f32 %v2206_v26, %v2126_v35  ;;  %v2334_v26 = vadd.f32 %v2200_v23, %v2126_v35 }
 0x107   :  { %3354 = vst [vmem:[#allocation5_spill] sm:$0xff] %v2316_v58 }
 0x108   :  { %3355 = vst [vmem:[#allocation6_spill] sm:$0xff] %v2320_v62  ;;  %3356 = vst [vmem:[#allocation7_spill] sm:$0xff] %v2334_v26 }
 0x109   :  { %667 = vadd.xlane.f32.xlu1 %v666_v7  ;;  %664 = vadd.xlane.f32.xlu0 %v663_v10  ;;  %v1679_v11 = vpop.f32.mrb[20].mxu0  ;;  %v1711_v14 = vpop.f32.mrb[20].mxu1  ;;  %v657_v7 = vsel %vm536_vm1, %v2286_v16, 0.0 }
 0x10a   :  { %v2279_v15 = vadd.f32 %v1679_v11, %v2126_v35  ;;  %v359_v20 = vpop.f32.mrb[21].mxu0  ;;  %v2282_v8 = vadd.f32 %v1711_v14, %v2126_v35  ;;  %v487_v21 = vpop.f32.mrb[21].mxu1 }
 0x10b   :  { %v2293_v31 = vadd.f32 %v2126_v35, %v359_v20  ;;  %v1680_v37 = vpop.f32.mrb[22].mxu0  ;;  %v2296_v40 = vadd.f32 %v2126_v35, %v487_v21  ;;  %v1712_v41 = vpop.f32.mrb[22].mxu1 }
 0x10c   :  { %v2303_v9 = vadd.f32 %v1680_v37, %v2126_v35  ;;  %v362_v48 = vpop.f32.mrb[23].mxu0  ;;  %v2306_v17 = vadd.f32 %v1712_v41, %v2126_v35  ;;  %v490_v54 = vpop.f32.mrb[23].mxu1  ;;  %v2338_v37 = vadd.f32 %v2208_v27, %v2126_v35 }
 0x10d   :  { %565 = vadd.xlane.f32.xlu1 %v564_v42  ;;  %562 = vadd.xlane.f32.xlu0 %v561_v46  ;;  %v2309_v56 = vadd.f32 %v2126_v35, %v362_v48  ;;  %v2312_v57 = vadd.f32 %v2126_v35, %v490_v54  ;;  %v582_v54 = vsel %vm536_vm1, %v2320_v62, 0.0 }
 0x10e   :  { %3357 = vst [vmem:[#allocation8_spill] sm:$0xff] %v2338_v37 }
 0x111   :  { %661 = vadd.xlane.f32.xlu1 %v660_v0  ;;  %658 = vadd.xlane.f32.xlu0 %v657_v7  ;;  %v1683_v10 = vpop.f32.mrb[24].mxu0  ;;  %v1715_v11 = vpop.f32.mrb[24].mxu1  ;;  %v579_v0 = vsel %vm536_vm1, %v2316_v58, 0.0 }
 0x112   :  { %v2327_v14 = vadd.f32 %v1683_v10, %v2126_v35  ;;  %v375_v20 = vpop.f32.mrb[25].mxu0  ;;  %v2330_v22 = vadd.f32 %v1715_v11, %v2126_v35  ;;  %v503_v21 = vpop.f32.mrb[25].mxu1 }
 0x113   :  { %v2341_v41 = vadd.f32 %v2126_v35, %v375_v20  ;;  %v1684_v42 = vpop.f32.mrb[26].mxu0  ;;  %v2344_v46 = vadd.f32 %v2126_v35, %v503_v21  ;;  %v1716_v48 = vpop.f32.mrb[26].mxu1  ;;  %v2364_v21 = vadd.f32 %v2126_v35, %v2202_v24 }
 0x114   :  { %v2351_v23 = vadd.f32 %v1684_v42, %v2126_v35  ;;  %v378_v7 = vpop.f32.mrb[27].mxu0  ;;  %v2354_v27 = vadd.f32 %v1716_v48, %v2126_v35  ;;  %v506_v10 = vpop.f32.mrb[27].mxu1  ;;  %v2368_v42 = vadd.f32 %v2126_v35, %v2220_v32  ;;  %v678_v48 = vsel %vm536_vm1, %v2338_v37, 0.0 }
 0x115   :  { %583 = vadd.xlane.f32.xlu1 %v582_v54  ;;  %580 = vadd.xlane.f32.xlu0 %v579_v0  ;;  %v2357_v11 = vadd.f32 %v2126_v35, %v378_v7  ;;  %v2360_v20 = vadd.f32 %v2126_v35, %v506_v10  ;;  %v675_v54 = vsel %vm536_vm1, %v2334_v26, 0.0  ;;  %v2382_v32 = vadd.f32 %v2126_v35, %v2204_v25 }
 0x116   :  { %3358 = vst [vmem:[#allocation9_spill] sm:$0xff] %v2368_v42  ;;  %v2386_v37 = vadd.f32 %v2126_v35, %v2222_v33  ;;  %v573_v16 = vsel %vm536_vm1, %v2364_v21, 0.0 }
 0x119   :  { %679 = vadd.xlane.f32.xlu1 %v678_v48  ;;  %676 = vadd.xlane.f32.xlu0 %v675_v54  ;;  %v1687_v0 = vpop.f32.mrb[28].mxu0  ;;  %v1719_v7 = vpop.f32.mrb[28].mxu1 }
 0x11a   :  { %v2375_v10 = vadd.f32 %v1687_v0, %v2126_v35  ;;  %v391_v58 = vpop.f32.mrb[29].mxu0  ;;  %v2378_v24 = vadd.f32 %v1719_v7, %v2126_v35  ;;  %v519_v62 = vpop.f32.mrb[29].mxu1  ;;  %v576_v7 = vsel %vm536_vm1, %v2368_v42, 0.0  ;;  %v672_v42 = vsel %vm536_vm1, %v2386_v37, 0.0 }
 0x11b   :  { %v2389_v48 = vadd.f32 %v2126_v35, %v391_v58  ;;  %v1688_v54 = vpop.f32.mrb[30].mxu0  ;;  %v2392_v0 = vadd.f32 %v2126_v35, %v519_v62  ;;  %v1720_v26 = vpop.f32.mrb[30].mxu1 }
 0x11c   :  { %3359 = vst [vmem:[#allocation10_spill] sm:$0xff] %v2378_v24  ;;  %v2399_v25 = vadd.f32 %v1688_v54, %v2126_v35  ;;  %v394_v30 = vpop.f32.mrb[31].mxu0  ;;  %v2402_v33 = vadd.f32 %v1720_v26, %v2126_v35  ;;  %v522_v58 = vpop.f32.mrb[31].mxu1  ;;  %v669_v54 = vsel %vm536_vm1, %v2382_v32, 0.0  ;;  %v594_v26 = vsel %vm536_vm1, %v2257_v59, 0.0 }
 0x11d   :  { %3360 = vst [vmem:[#allocation11_spill] sm:$0xff] %v2389_v48  ;;  %577 = vadd.xlane.f32.xlu1 %v576_v7  ;;  %574 = vadd.xlane.f32.xlu0 %v573_v16  ;;  %v2405_v62 = vadd.f32 %v2126_v35, %v394_v30  ;;  %v2408_v5 = vadd.f32 %v2126_v35, %v522_v58  ;;  %v591_v16 = vsel %vm536_vm1, %v2235_v43, 0.0  ;;  %v690_v35 = vsel %vm536_vm1, %v2260_v63, 0.0 }
 0x11e   :  { %3361 = vst [vmem:[#allocation12_spill] sm:$0xff] %v2402_v33  ;;  %v687_v30 = vsel %vm536_vm1, %v2238_v47, 0.0  ;;  %v585_v7 = vsel %vm536_vm1, %v2247_v53, 0.0  ;;  %v684_v58 = vsel %vm536_vm1, %v2266_v4, 0.0 }
 0x11f   :  { %3362 = vst [vmem:[#allocation13_spill] sm:$0xff] %v2405_v62  ;;  %3363 = vst [vmem:[#allocation14_spill] sm:$0xff] %v2408_v5 }
 0x121   :  { %673 = vadd.xlane.f32.xlu1 %v672_v42  ;;  %670 = vadd.xlane.f32.xlu0 %v669_v54  ;;  %v588_v42 = vsel %vm536_vm1, %v2263_v1, 0.0  ;;  %v681_v54 = vsel %vm536_vm1, %v2250_v55, 0.0 }
 0x125   :  { %595 = vadd.xlane.f32.xlu1 %v594_v26  ;;  %592 = vadd.xlane.f32.xlu0 %v591_v16  ;;  %v606_v26 = vsel %vm536_vm1, %v2303_v9, 0.0  ;;  %v603_v16 = vsel %vm536_vm1, %v2279_v15, 0.0 }
 0x129   :  { %691 = vadd.xlane.f32.xlu1 %v690_v35  ;;  %688 = vadd.xlane.f32.xlu0 %v687_v30  ;;  %v702_v35 = vsel %vm536_vm1, %v2306_v17, 0.0  ;;  %v699_v30 = vsel %vm536_vm1, %v2282_v8, 0.0 }
 0x12d   :  { %589 = vadd.xlane.f32.xlu1 %v588_v42  ;;  %586 = vadd.xlane.f32.xlu0 %v585_v7  ;;  %v600_v42 = vsel %vm536_vm1, %v2309_v56, 0.0  ;;  %v597_v7 = vsel %vm536_vm1, %v2293_v31, 0.0 }
 0x131   :  { %685 = vadd.xlane.f32.xlu1 %v684_v58  ;;  %682 = vadd.xlane.f32.xlu0 %v681_v54  ;;  %v696_v58 = vsel %vm536_vm1, %v2312_v57, 0.0  ;;  %v693_v54 = vsel %vm536_vm1, %v2296_v40, 0.0 }
 0x135   :  { %607 = vadd.xlane.f32.xlu1 %v606_v26  ;;  %604 = vadd.xlane.f32.xlu0 %v603_v16  ;;  %v618_v26 = vsel %vm536_vm1, %v2351_v23, 0.0  ;;  %v615_v16 = vsel %vm536_vm1, %v2327_v14, 0.0 }
 0x139   :  { %703 = vadd.xlane.f32.xlu1 %v702_v35  ;;  %700 = vadd.xlane.f32.xlu0 %v699_v30  ;;  %v714_v35 = vsel %vm536_vm1, %v2354_v27, 0.0  ;;  %v711_v30 = vsel %vm536_vm1, %v2330_v22, 0.0 }
 0x13d   :  { %601 = vadd.xlane.f32.xlu1 %v600_v42  ;;  %598 = vadd.xlane.f32.xlu0 %v597_v7  ;;  %v612_v42 = vsel %vm536_vm1, %v2357_v11, 0.0  ;;  %v609_v7 = vsel %vm536_vm1, %v2341_v41, 0.0 }
 0x141   :  { %697 = vadd.xlane.f32.xlu1 %v696_v58  ;;  %694 = vadd.xlane.f32.xlu0 %v693_v54  ;;  %v708_v58 = vsel %vm536_vm1, %v2360_v20, 0.0  ;;  %v705_v54 = vsel %vm536_vm1, %v2344_v46, 0.0 }
 0x145   :  { %619 = vadd.xlane.f32.xlu1 %v618_v26  ;;  %616 = vadd.xlane.f32.xlu0 %v615_v16  ;;  %v630_v26 = vsel %vm536_vm1, %v2399_v25, 0.0  ;;  %v627_v16 = vsel %vm536_vm1, %v2375_v10, 0.0 }
 0x149   :  { %715 = vadd.xlane.f32.xlu1 %v714_v35  ;;  %712 = vadd.xlane.f32.xlu0 %v711_v30  ;;  %v726_v35 = vsel %vm536_vm1, %v2402_v33, 0.0  ;;  %v723_v30 = vsel %vm536_vm1, %v2378_v24, 0.0 }
 0x14d   :  { %613 = vadd.xlane.f32.xlu1 %v612_v42  ;;  %610 = vadd.xlane.f32.xlu0 %v609_v7  ;;  %v624_v42 = vsel %vm536_vm1, %v2405_v62, 0.0  ;;  %v621_v7 = vsel %vm536_vm1, %v2389_v48, 0.0 }
 0x151   :  { %709 = vadd.xlane.f32.xlu1 %v708_v58  ;;  %706 = vadd.xlane.f32.xlu0 %v705_v54  ;;  %v720_v58 = vsel %vm536_vm1, %v2408_v5, 0.0  ;;  %v717_v54 = vsel %vm536_vm1, %v2392_v0, 0.0 }
 0x155   :  { %631 = vadd.xlane.f32.xlu1 %v630_v26  ;;  %628 = vadd.xlane.f32.xlu0 %v627_v16 }
 0x159   :  { %727 = vadd.xlane.f32.xlu1 %v726_v35  ;;  %724 = vadd.xlane.f32.xlu0 %v723_v30 }
 0x15d   :  { %625 = vadd.xlane.f32.xlu1 %v624_v42  ;;  %622 = vadd.xlane.f32.xlu0 %v621_v7 }
 0x161   :  { %721 = vadd.xlane.f32.xlu1 %v720_v58  ;;  %718 = vadd.xlane.f32.xlu0 %v717_v54 }
 0x172   :  { %v641_v26 = vpop.xlane.xlu0 %640  ;;  %v545_v16 = vpop.xlane.xlu1 %544 }
 0x173   :  { %v764_v35 = vmul.f32 0.0625, %v641_v26  ;;  %v732_v30 = vmul.f32 0.0625, %v545_v16 }
 0x175   :  { %v2479_v24 = vsub.f32 %v2132_v39, %v764_v35  ;;  %v2482_v33 = vsub.f32 %v2129_v38, %v732_v30 }
 0x176   :  { %v548_v42 = vpop.xlane.xlu1 %547  ;;  %v539_v7 = vpop.xlane.xlu0 %538 }
 0x177   :  { %3364 = vst [vmem:[#allocation15_spill] sm:$0xff] %v2479_v24  ;;  %v733_v48 = vmul.f32 0.0625, %v548_v42  ;;  %v730_v62 = vmul.f32 0.0625, %v539_v7  ;;  %v860_v5 = vmul.f32 %v2482_v33, %v2482_v33  ;;  %v892_v58 = vmul.f32 %v2479_v24, %v2479_v24 }
 0x179   :  { %v2489_v54 = vsub.f32 %v2138_v45, %v733_v48  ;;  %v2492_v26 = vsub.f32 %v2135_v44, %v730_v62  ;;  %v928_v39 = vsel %vm536_vm1, %v860_v5, 0.0  ;;  %v1024_v7 = vsel %vm536_vm1, %v892_v58, 0.0 }
 0x17a   :  { %v644_v38 = vpop.xlane.xlu1 %643  ;;  %929 = vadd.xlane.f32.xlu0 %v928_v39  ;;  %v635_v16 = vpop.xlane.xlu0 %634 }
 0x17b   :  { %v765_v35 = vmul.f32 0.0625, %v644_v38  ;;  %v762_v30 = vmul.f32 0.0625, %v635_v16  ;;  %v861_v42 = vmul.f32 %v2489_v54, %v2489_v54  ;;  %v858_v5 = vmul.f32 %v2492_v26, %v2492_v26 }
 0x17d   :  { %v2499_v24 = vsub.f32 %v2148_v51, %v765_v35  ;;  %v2502_v45 = vsub.f32 %v2145_v50, %v762_v30  ;;  %v931_v44 = vsel %vm536_vm1, %v861_v42, 0.0  ;;  %v922_v30 = vsel %vm536_vm1, %v858_v5, 0.0 }
 0x17e   :  { %v638_v48 = vpop.xlane.xlu1 %637  ;;  %932 = vadd.xlane.f32.xlu1 %v931_v44  ;;  %1025 = vadd.xlane.f32.xlu0 %v1024_v7  ;;  %v542_v62 = vpop.xlane.xlu0 %541 }
 0x17f   :  { %3365 = vst [vmem:[#allocation16_spill] sm:$0xff] %v2502_v45  ;;  %v763_v39 = vmul.f32 0.0625, %v638_v48  ;;  %v731_v38 = vmul.f32 0.0625, %v542_v62  ;;  %v893_v58 = vmul.f32 %v2499_v24, %v2499_v24  ;;  %v890_v51 = vmul.f32 %v2502_v45, %v2502_v45 }
 0x181   :  { %v2512_v50 = vsub.f32 %v2158_v61, %v763_v39  ;;  %v2515_v16 = vsub.f32 %v2155_v60, %v731_v38  ;;  %v1027_v35 = vsel %vm536_vm1, %v893_v58, 0.0  ;;  %v1018_v45 = vsel %vm536_vm1, %v890_v51, 0.0 }
 0x182   :  { %v560_v42 = vpop.xlane.xlu1 %559  ;;  %1028 = vadd.xlane.f32.xlu1 %v1027_v35  ;;  %923 = vadd.xlane.f32.xlu0 %v922_v30  ;;  %v557_v7 = vpop.xlane.xlu0 %556 }
 0x183   :  { %v737_v44 = vmul.f32 0.0625, %v560_v42  ;;  %v736_v48 = vmul.f32 0.0625, %v557_v7  ;;  %v859_v62 = vmul.f32 %v2515_v16, %v2515_v16  ;;  %v891_v5 = vmul.f32 %v2512_v50, %v2512_v50 }
 0x185   :  { %v2523_v61 = vsub.f32 %v2168_v3, %v737_v44  ;;  %v2526_v60 = vsub.f32 %v2165_v2, %v736_v48  ;;  %v925_v39 = vsel %vm536_vm1, %v859_v62, 0.0  ;;  %v1021_v7 = vsel %vm536_vm1, %v891_v5, 0.0 }
 0x186   :  { %v656_v38 = vpop.xlane.xlu1 %655  ;;  %1019 = vadd.xlane.f32.xlu0 %v1018_v45  ;;  %926 = vadd.xlane.f32.xlu1 %v925_v39  ;;  %v653_v58 = vpop.xlane.xlu0 %652 }
 0x187   :  { %v769_v35 = vmul.f32 0.0625, %v656_v38  ;;  %v768_v30 = vmul.f32 0.0625, %v653_v58  ;;  %v864_v51 = vmul.f32 %v2526_v60, %v2526_v60  ;;  %v865_v3 = vmul.f32 %v2523_v61, %v2523_v61 }
 0x189   :  { %v2536_v2 = vsub.f32 %v2180_v13, %v769_v35  ;;  %v2539_v42 = vsub.f32 %v2177_v12, %v768_v30  ;;  %v940_v45 = vsel %vm536_vm1, %v864_v51, 0.0  ;;  %v943_v58 = vsel %vm536_vm1, %v865_v3, 0.0 }
 0x18a   :  { %v554_v44 = vpop.xlane.xlu1 %553  ;;  %1022 = vadd.xlane.f32.xlu1 %v1021_v7  ;;  %941 = vadd.xlane.f32.xlu0 %v940_v45  ;;  %v551_v48 = vpop.xlane.xlu0 %550 }
 0x18b   :  { %v735_v62 = vmul.f32 0.0625, %v554_v44  ;;  %v734_v39 = vmul.f32 0.0625, %v551_v48  ;;  %v896_v38 = vmul.f32 %v2539_v42, %v2539_v42  ;;  %v897_v35 = vmul.f32 %v2536_v2, %v2536_v2 }
 0x18d   :  { %v2547_v13 = vsub.f32 %v2192_v19, %v735_v62  ;;  %v2550_v12 = vsub.f32 %v2189_v18, %v734_v39  ;;  %v1036_v5 = vsel %vm536_vm1, %v896_v38, 0.0  ;;  %v1039_v48 = vsel %vm536_vm1, %v897_v35, 0.0 }
 0x18e   :  { %v650_v30 = vpop.xlane.xlu1 %649  ;;  %944 = vadd.xlane.f32.xlu1 %v943_v58  ;;  %1037 = vadd.xlane.f32.xlu0 %v1036_v5  ;;  %v647_v51 = vpop.xlane.xlu0 %646 }
 0x18f   :  { %v767_v7 = vmul.f32 0.0625, %v650_v30  ;;  %v766_v45 = vmul.f32 0.0625, %v647_v51  ;;  %v862_v3 = vmul.f32 %v2550_v12, %v2550_v12  ;;  %v863_v19 = vmul.f32 %v2547_v13, %v2547_v13 }
 0x191   :  { %v2560_v18 = vsub.f32 %v2214_v29, %v767_v7  ;;  %v2563_v44 = vsub.f32 %v2211_v28, %v766_v45  ;;  %v934_v62 = vsel %vm536_vm1, %v862_v3, 0.0  ;;  %v937_v51 = vsel %vm536_vm1, %v863_v19, 0.0 }
 0x192   :  { %v572_v39 = vpop.xlane.xlu1 %571  ;;  %1040 = vadd.xlane.f32.xlu1 %v1039_v48  ;;  %935 = vadd.xlane.f32.xlu0 %v934_v62  ;;  %v569_v38 = vpop.xlane.xlu0 %568 }
 0x193   :  { %v741_v58 = vmul.f32 0.0625, %v572_v39  ;;  %v740_v5 = vmul.f32 0.0625, %v569_v38  ;;  %v894_v30 = vmul.f32 %v2563_v44, %v2563_v44  ;;  %v895_v7 = vmul.f32 %v2560_v18, %v2560_v18 }
 0x195   :  { %v2571_v29 = vsub.f32 %v2228_v36, %v741_v58  ;;  %v2574_v28 = vsub.f32 %v2225_v34, %v740_v5  ;;  %v1030_v35 = vsel %vm536_vm1, %v894_v30, 0.0  ;;  %v1033_v38 = vsel %vm536_vm1, %v895_v7, 0.0 }
 0x196   :  { %v668_v45 = vpop.xlane.xlu1 %667  ;;  %938 = vadd.xlane.f32.xlu1 %v937_v51  ;;  %1031 = vadd.xlane.f32.xlu0 %v1030_v35  ;;  %v665_v3 = vpop.xlane.xlu0 %664 }
 0x197   :  { %v773_v48 = vmul.f32 0.0625, %v668_v45  ;;  %v772_v62 = vmul.f32 0.0625, %v665_v3  ;;  %v868_v19 = vmul.f32 %v2574_v28, %v2574_v28  ;;  %v869_v36 = vmul.f32 %v2571_v29, %v2571_v29 }
 0x199   :  { %v2584_v34 = vsub.f32 %v2244_v52, %v773_v48  ;;  %v2587_v39 = vsub.f32 %v2241_v49, %v772_v62  ;;  %v952_v58 = vsel %vm536_vm1, %v868_v19, 0.0  ;;  %v955_v3 = vsel %vm536_vm1, %v869_v36, 0.0  ;;  %v3368_v49 = vld [vmem:[#allocation2_spill] sm:$0xff] }
 0x19a   :  { %v566_v5 = vpop.xlane.xlu1 %565  ;;  %1034 = vadd.xlane.f32.xlu1 %v1033_v38  ;;  %953 = vadd.xlane.f32.xlu0 %v952_v58  ;;  %v563_v30 = vpop.xlane.xlu0 %562 }
 0x19b   :  { %3366 = vst [vmem:[#allocation17_spill] sm:$0xff] %v2584_v34  ;;  %v739_v51 = vmul.f32 0.0625, %v566_v5  ;;  %v738_v35 = vmul.f32 0.0625, %v563_v30  ;;  %v900_v45 = vmul.f32 %v2587_v39, %v2587_v39  ;;  %v901_v62 = vmul.f32 %v2584_v34, %v2584_v34  ;;  %v3370_v30 = vld [vmem:[#allocation4_spill] sm:$0xff] }
 0x19d   :  { %v2595_v52 = vsub.f32 %v2272_v6, %v739_v51  ;;  %v2598_v48 = vsub.f32 %v3368_v49, %v738_v35  ;;  %v1048_v7 = vsel %vm536_vm1, %v900_v45, 0.0  ;;  %v3372_v35 = vld [vmem:[#allocation3_spill] sm:$0xff]  ;;  %v1051_v49 = vsel %vm536_vm1, %v901_v62, 0.0 }
 0x19e   :  { %v662_v19 = vpop.xlane.xlu1 %661  ;;  %956 = vadd.xlane.f32.xlu1 %v955_v3  ;;  %1049 = vadd.xlane.f32.xlu0 %v1048_v7  ;;  %v659_v38 = vpop.xlane.xlu0 %658 }
 0x19f   :  { %3367 = vst [vmem:[#allocation18_spill] sm:$0xff] %v2595_v52  ;;  %3369 = vst [vmem:[#allocation2_spill] sm:$0xff] %v2598_v48  ;;  %v771_v58 = vmul.f32 0.0625, %v662_v19  ;;  %v770_v5 = vmul.f32 0.0625, %v659_v38  ;;  %v866_v36 = vmul.f32 %v2598_v48, %v2598_v48  ;;  %v867_v6 = vmul.f32 %v2595_v52, %v2595_v52 }
 0x1a1   :  { %v2608_v51 = vsub.f32 %v3370_v30, %v771_v58  ;;  %v2611_v45 = vsub.f32 %v3372_v35, %v770_v5  ;;  %v946_v3 = vsel %vm536_vm1, %v866_v36, 0.0  ;;  %v949_v52 = vsel %vm536_vm1, %v867_v6, 0.0  ;;  %v3374_v58 = vld [vmem:[#allocation6_spill] sm:$0xff]  ;;  %v3376_v5 = vld [vmem:[#allocation5_spill] sm:$0xff] }
 0x1a2   :  { %v584_v7 = vpop.xlane.xlu1 %583  ;;  %1052 = vadd.xlane.f32.xlu1 %v1051_v49  ;;  %947 = vadd.xlane.f32.xlu0 %v946_v3  ;;  %v581_v19 = vpop.xlane.xlu0 %580 }
 0x1a3   :  { %3371 = vst [vmem:[#allocation4_spill] sm:$0xff] %v2608_v51  ;;  %3373 = vst [vmem:[#allocation3_spill] sm:$0xff] %v2611_v45  ;;  %v745_v38 = vmul.f32 0.0625, %v584_v7  ;;  %v744_v34 = vmul.f32 0.0625, %v581_v19  ;;  %v898_v48 = vmul.f32 %v2611_v45, %v2611_v45  ;;  %v899_v36 = vmul.f32 %v2608_v51, %v2608_v51 }
 0x1a5   :  { %v2619_v30 = vsub.f32 %v3374_v58, %v745_v38  ;;  %v2622_v35 = vsub.f32 %v3376_v5, %v744_v34  ;;  %v1042_v62 = vsel %vm536_vm1, %v898_v48, 0.0  ;;  %v3378_v58 = vld [vmem:[#allocation8_spill] sm:$0xff]  ;;  %v3379_v5 = vld [vmem:[#allocation7_spill] sm:$0xff]  ;;  %v1045_v51 = vsel %vm536_vm1, %v899_v36, 0.0 }
 0x1a6   :  { %v680_v49 = vpop.xlane.xlu1 %679  ;;  %950 = vadd.xlane.f32.xlu1 %v949_v52  ;;  %1043 = vadd.xlane.f32.xlu0 %v1042_v62  ;;  %v677_v3 = vpop.xlane.xlu0 %676 }
 0x1a7   :  { %3375 = vst [vmem:[#allocation6_spill] sm:$0xff] %v2619_v30  ;;  %3377 = vst [vmem:[#allocation5_spill] sm:$0xff] %v2622_v35  ;;  %v777_v7 = vmul.f32 0.0625, %v680_v49  ;;  %v776_v19 = vmul.f32 0.0625, %v677_v3  ;;  %v872_v6 = vmul.f32 %v2622_v35, %v2622_v35  ;;  %v873_v38 = vmul.f32 %v2619_v30, %v2619_v30 }
 0x1a9   :  { %v2632_v34 = vsub.f32 %v3378_v58, %v777_v7  ;;  %v2635_v48 = vsub.f32 %v3379_v5, %v776_v19  ;;  %v964_v52 = vsel %vm536_vm1, %v872_v6, 0.0  ;;  %v967_v30 = vsel %vm536_vm1, %v873_v38, 0.0  ;;  %v3380_v7 = vld [vmem:[#allocation9_spill] sm:$0xff] }
 0x1aa   :  { %v578_v62 = vpop.xlane.xlu1 %577  ;;  %1046 = vadd.xlane.f32.xlu1 %v1045_v51  ;;  %965 = vadd.xlane.f32.xlu0 %v964_v52  ;;  %v575_v49 = vpop.xlane.xlu0 %574 }
 0x1ab   :  { %v743_v3 = vmul.f32 0.0625, %v578_v62  ;;  %v742_v45 = vmul.f32 0.0625, %v575_v49  ;;  %v904_v35 = vmul.f32 %v2635_v48, %v2635_v48  ;;  %v905_v51 = vmul.f32 %v2632_v34, %v2632_v34 }
 0x1ad   :  { %v2643_v58 = vsub.f32 %v3380_v7, %v743_v3  ;;  %v2646_v19 = vsub.f32 %v2364_v21, %v742_v45  ;;  %v1060_v36 = vsel %vm536_vm1, %v904_v35, 0.0  ;;  %v1063_v35 = vsel %vm536_vm1, %v905_v51, 0.0 }
 0x1ae   :  { %v674_v6 = vpop.xlane.xlu1 %673  ;;  %968 = vadd.xlane.f32.xlu1 %v967_v30  ;;  %1061 = vadd.xlane.f32.xlu0 %v1060_v36  ;;  %v671_v5 = vpop.xlane.xlu0 %670 }
 0x1af   :  { %3381 = vst [vmem:[#allocation8_spill] sm:$0xff] %v2643_v58  ;;  %v775_v52 = vmul.f32 0.0625, %v674_v6  ;;  %v774_v62 = vmul.f32 0.0625, %v671_v5  ;;  %v870_v38 = vmul.f32 %v2646_v19, %v2646_v19  ;;  %v871_v49 = vmul.f32 %v2643_v58, %v2643_v58 }
 0x1b1   :  { %v2656_v21 = vsub.f32 %v2386_v37, %v775_v52  ;;  %v2659_v45 = vsub.f32 %v2382_v32, %v774_v62  ;;  %v958_v30 = vsel %vm536_vm1, %v870_v38, 0.0  ;;  %v961_v58 = vsel %vm536_vm1, %v871_v49, 0.0 }
 0x1b2   :  { %v596_v3 = vpop.xlane.xlu1 %595  ;;  %1064 = vadd.xlane.f32.xlu1 %v1063_v35  ;;  %959 = vadd.xlane.f32.xlu0 %v958_v30  ;;  %v593_v7 = vpop.xlane.xlu0 %592 }
 0x1b3   :  { %v749_v36 = vmul.f32 0.0625, %v596_v3  ;;  %v748_v6 = vmul.f32 0.0625, %v593_v7  ;;  %v902_v5 = vmul.f32 %v2659_v45, %v2659_v45  ;;  %v903_v52 = vmul.f32 %v2656_v21, %v2656_v21 }
 0x1b5   :  { %v2667_v37 = vsub.f32 %v2257_v59, %v749_v36  ;;  %v2670_v32 = vsub.f32 %v2235_v43, %v748_v6  ;;  %v1054_v51 = vsel %vm536_vm1, %v902_v5, 0.0  ;;  %v1057_v7 = vsel %vm536_vm1, %v903_v52, 0.0 }
 0x1b6   :  { %v692_v62 = vpop.xlane.xlu1 %691  ;;  %962 = vadd.xlane.f32.xlu1 %v961_v58  ;;  %1055 = vadd.xlane.f32.xlu0 %v1054_v51  ;;  %v689_v38 = vpop.xlane.xlu0 %688 }
 0x1b7   :  { %v781_v35 = vmul.f32 0.0625, %v692_v62  ;;  %v780_v30 = vmul.f32 0.0625, %v689_v38  ;;  %v876_v49 = vmul.f32 %v2670_v32, %v2670_v32  ;;  %v877_v59 = vmul.f32 %v2667_v37, %v2667_v37 }
 0x1b9   :  { %v2680_v43 = vsub.f32 %v2260_v63, %v781_v35  ;;  %v2683_v3 = vsub.f32 %v2238_v47, %v780_v30  ;;  %v976_v58 = vsel %vm536_vm1, %v876_v49, 0.0  ;;  %v979_v38 = vsel %vm536_vm1, %v877_v59, 0.0 }
 0x1ba   :  { %v590_v36 = vpop.xlane.xlu1 %589  ;;  %1058 = vadd.xlane.f32.xlu1 %v1057_v7  ;;  %977 = vadd.xlane.f32.xlu0 %v976_v58  ;;  %v587_v6 = vpop.xlane.xlu0 %586 }
 0x1bb   :  { %v747_v5 = vmul.f32 0.0625, %v590_v36  ;;  %v746_v51 = vmul.f32 0.0625, %v587_v6  ;;  %v908_v62 = vmul.f32 %v2683_v3, %v2683_v3  ;;  %v909_v35 = vmul.f32 %v2680_v43, %v2680_v43 }
 0x1bd   :  { %v2691_v63 = vsub.f32 %v2263_v1, %v747_v5  ;;  %v2694_v47 = vsub.f32 %v2247_v53, %v746_v51  ;;  %v1072_v52 = vsel %vm536_vm1, %v908_v62, 0.0  ;;  %v1075_v6 = vsel %vm536_vm1, %v909_v35, 0.0 }
 0x1be   :  { %v686_v30 = vpop.xlane.xlu1 %685  ;;  %980 = vadd.xlane.f32.xlu1 %v979_v38  ;;  %1073 = vadd.xlane.f32.xlu0 %v1072_v52  ;;  %v683_v49 = vpop.xlane.xlu0 %682 }
 0x1bf   :  { %v779_v7 = vmul.f32 0.0625, %v686_v30  ;;  %v778_v58 = vmul.f32 0.0625, %v683_v49  ;;  %v874_v59 = vmul.f32 %v2694_v47, %v2694_v47  ;;  %v875_v1 = vmul.f32 %v2691_v63, %v2691_v63 }
 0x1c1   :  { %v2704_v53 = vsub.f32 %v2266_v4, %v779_v7  ;;  %v2707_v36 = vsub.f32 %v2250_v55, %v778_v58  ;;  %v970_v5 = vsel %vm536_vm1, %v874_v59, 0.0  ;;  %v973_v49 = vsel %vm536_vm1, %v875_v1, 0.0 }
 0x1c2   :  { %v608_v51 = vpop.xlane.xlu1 %607  ;;  %1076 = vadd.xlane.f32.xlu1 %v1075_v6  ;;  %971 = vadd.xlane.f32.xlu0 %v970_v5  ;;  %v605_v62 = vpop.xlane.xlu0 %604 }
 0x1c3   :  { %v753_v38 = vmul.f32 0.0625, %v608_v51  ;;  %v752_v52 = vmul.f32 0.0625, %v605_v62  ;;  %v906_v30 = vmul.f32 %v2707_v36, %v2707_v36  ;;  %v907_v7 = vmul.f32 %v2704_v53, %v2704_v53 }
 0x1c5   :  { %v2715_v4 = vsub.f32 %v2303_v9, %v753_v38  ;;  %v2718_v55 = vsub.f32 %v2279_v15, %v752_v52  ;;  %v1066_v35 = vsel %vm536_vm1, %v906_v30, 0.0  ;;  %v1069_v62 = vsel %vm536_vm1, %v907_v7, 0.0 }
 0x1c6   :  { %v704_v58 = vpop.xlane.xlu1 %703  ;;  %974 = vadd.xlane.f32.xlu1 %v973_v49  ;;  %1067 = vadd.xlane.f32.xlu0 %v1066_v35  ;;  %v701_v59 = vpop.xlane.xlu0 %700 }
 0x1c7   :  { %v785_v6 = vmul.f32 0.0625, %v704_v58  ;;  %v784_v5 = vmul.f32 0.0625, %v701_v59  ;;  %v880_v1 = vmul.f32 %v2718_v55, %v2718_v55  ;;  %v881_v9 = vmul.f32 %v2715_v4, %v2715_v4 }
 0x1c9   :  { %v2728_v15 = vsub.f32 %v2306_v17, %v785_v6  ;;  %v2731_v51 = vsub.f32 %v2282_v8, %v784_v5  ;;  %v988_v38 = vsel %vm536_vm1, %v880_v1, 0.0  ;;  %v991_v59 = vsel %vm536_vm1, %v881_v9, 0.0 }
 0x1ca   :  { %v602_v52 = vpop.xlane.xlu1 %601  ;;  %1070 = vadd.xlane.f32.xlu1 %v1069_v62  ;;  %989 = vadd.xlane.f32.xlu0 %v988_v38  ;;  %v599_v30 = vpop.xlane.xlu0 %598 }
 0x1cb   :  { %v751_v49 = vmul.f32 0.0625, %v602_v52  ;;  %v750_v35 = vmul.f32 0.0625, %v599_v30  ;;  %v912_v58 = vmul.f32 %v2731_v51, %v2731_v51  ;;  %v913_v6 = vmul.f32 %v2728_v15, %v2728_v15 }
 0x1cd   :  { %v2739_v17 = vsub.f32 %v2309_v56, %v751_v49  ;;  %v2742_v8 = vsub.f32 %v2293_v31, %v750_v35  ;;  %v1084_v7 = vsel %vm536_vm1, %v912_v58, 0.0  ;;  %v1087_v30 = vsel %vm536_vm1, %v913_v6, 0.0 }
 0x1ce   :  { %v698_v5 = vpop.xlane.xlu1 %697  ;;  %992 = vadd.xlane.f32.xlu1 %v991_v59  ;;  %1085 = vadd.xlane.f32.xlu0 %v1084_v7  ;;  %v695_v1 = vpop.xlane.xlu0 %694 }
 0x1cf   :  { %v783_v62 = vmul.f32 0.0625, %v698_v5  ;;  %v782_v38 = vmul.f32 0.0625, %v695_v1  ;;  %v878_v9 = vmul.f32 %v2742_v8, %v2742_v8  ;;  %v879_v56 = vmul.f32 %v2739_v17, %v2739_v17 }
 0x1d1   :  { %v2752_v31 = vsub.f32 %v2312_v57, %v783_v62  ;;  %v2755_v52 = vsub.f32 %v2296_v40, %v782_v38  ;;  %v982_v49 = vsel %vm536_vm1, %v878_v9, 0.0  ;;  %v985_v1 = vsel %vm536_vm1, %v879_v56, 0.0 }
 0x1d2   :  { %v620_v35 = vpop.xlane.xlu1 %619  ;;  %1088 = vadd.xlane.f32.xlu1 %v1087_v30  ;;  %983 = vadd.xlane.f32.xlu0 %v982_v49  ;;  %v617_v58 = vpop.xlane.xlu0 %616 }
 0x1d3   :  { %v757_v59 = vmul.f32 0.0625, %v620_v35  ;;  %v756_v7 = vmul.f32 0.0625, %v617_v58  ;;  %v910_v5 = vmul.f32 %v2755_v52, %v2755_v52  ;;  %v911_v62 = vmul.f32 %v2752_v31, %v2752_v31 }
 0x1d5   :  { %v2763_v57 = vsub.f32 %v2351_v23, %v757_v59  ;;  %v2766_v40 = vsub.f32 %v2327_v14, %v756_v7  ;;  %v1078_v6 = vsel %vm536_vm1, %v910_v5, 0.0  ;;  %v1081_v58 = vsel %vm536_vm1, %v911_v62, 0.0 }
 0x1d6   :  { %v716_v38 = vpop.xlane.xlu1 %715  ;;  %986 = vadd.xlane.f32.xlu1 %v985_v1  ;;  %1079 = vadd.xlane.f32.xlu0 %v1078_v6  ;;  %v713_v9 = vpop.xlane.xlu0 %712 }
 0x1d7   :  { %v789_v30 = vmul.f32 0.0625, %v716_v38  ;;  %v788_v49 = vmul.f32 0.0625, %v713_v9  ;;  %v884_v56 = vmul.f32 %v2766_v40, %v2766_v40  ;;  %v885_v23 = vmul.f32 %v2763_v57, %v2763_v57 }
 0x1d9   :  { %v2776_v14 = vsub.f32 %v2354_v27, %v789_v30  ;;  %v2779_v35 = vsub.f32 %v2330_v22, %v788_v49  ;;  %v1000_v59 = vsel %vm536_vm1, %v884_v56, 0.0  ;;  %v1003_v9 = vsel %vm536_vm1, %v885_v23, 0.0 }
 0x1da   :  { %v614_v7 = vpop.xlane.xlu1 %613  ;;  %1082 = vadd.xlane.f32.xlu1 %v1081_v58  ;;  %1001 = vadd.xlane.f32.xlu0 %v1000_v59  ;;  %v611_v5 = vpop.xlane.xlu0 %610 }
 0x1db   :  { %v755_v1 = vmul.f32 0.0625, %v614_v7  ;;  %v754_v6 = vmul.f32 0.0625, %v611_v5  ;;  %v916_v38 = vmul.f32 %v2779_v35, %v2779_v35  ;;  %v917_v30 = vmul.f32 %v2776_v14, %v2776_v14 }
 0x1dd   :  { %v2787_v27 = vsub.f32 %v2357_v11, %v755_v1  ;;  %v2790_v22 = vsub.f32 %v2341_v41, %v754_v6  ;;  %v1096_v62 = vsel %vm536_vm1, %v916_v38, 0.0  ;;  %v1099_v5 = vsel %vm536_vm1, %v917_v30, 0.0 }
 0x1de   :  { %v710_v49 = vpop.xlane.xlu1 %709  ;;  %1004 = vadd.xlane.f32.xlu1 %v1003_v9  ;;  %1097 = vadd.xlane.f32.xlu0 %v1096_v62  ;;  %v707_v56 = vpop.xlane.xlu0 %706 }
 0x1df   :  { %3382 = vst [vmem:[#allocation7_spill] sm:$0xff] %v2787_v27  ;;  %v787_v58 = vmul.f32 0.0625, %v710_v49  ;;  %v786_v59 = vmul.f32 0.0625, %v707_v56  ;;  %v882_v23 = vmul.f32 %v2790_v22, %v2790_v22  ;;  %v883_v11 = vmul.f32 %v2787_v27, %v2787_v27 }
 0x1e1   :  { %v2800_v41 = vsub.f32 %v2360_v20, %v787_v58  ;;  %v2803_v7 = vsub.f32 %v2344_v46, %v786_v59  ;;  %v994_v1 = vsel %vm536_vm1, %v882_v23, 0.0  ;;  %v997_v56 = vsel %vm536_vm1, %v883_v11, 0.0 }
 0x1e2   :  { %v632_v6 = vpop.xlane.xlu1 %631  ;;  %1100 = vadd.xlane.f32.xlu1 %v1099_v5  ;;  %995 = vadd.xlane.f32.xlu0 %v994_v1  ;;  %v629_v38 = vpop.xlane.xlu0 %628 }
 0x1e3   :  { %3383 = vst [vmem:[#allocation9_spill] sm:$0xff] %v2800_v41  ;;  %3384 = vst [vmem:[#allocation19_spill] sm:$0xff] %v2803_v7  ;;  %v761_v9 = vmul.f32 0.0625, %v632_v6  ;;  %v760_v62 = vmul.f32 0.0625, %v629_v38  ;;  %v914_v49 = vmul.f32 %v2803_v7, %v2803_v7  ;;  %v915_v58 = vmul.f32 %v2800_v41, %v2800_v41  ;;  %v3388_v41 = vld [vmem:[#allocation11_spill] sm:$0xff] }
 0x1e5   :  { %v2811_v20 = vsub.f32 %v2399_v25, %v761_v9  ;;  %v2814_v46 = vsub.f32 %v2375_v10, %v760_v62  ;;  %v1090_v30 = vsel %vm536_vm1, %v914_v49, 0.0  ;;  %v1093_v11 = vsel %vm536_vm1, %v915_v58, 0.0 }
 0x1e6   :  { %v728_v59 = vpop.xlane.xlu1 %727  ;;  %998 = vadd.xlane.f32.xlu1 %v997_v56  ;;  %1091 = vadd.xlane.f32.xlu0 %v1090_v30  ;;  %v725_v23 = vpop.xlane.xlu0 %724  ;;  %v3387_v56 = vld [vmem:[#allocation13_spill] sm:$0xff] }
 0x1e7   :  { %3385 = vst [vmem:[#allocation20_spill] sm:$0xff] %v2811_v20  ;;  %3386 = vst [vmem:[#allocation21_spill] sm:$0xff] %v2814_v46  ;;  %v888_v5 = vmul.f32 %v2814_v46, %v2814_v46  ;;  %v889_v10 = vmul.f32 %v2811_v20, %v2811_v20  ;;  %v793_v62 = vmul.f32 0.0625, %v728_v59  ;;  %v792_v49 = vmul.f32 0.0625, %v725_v23  ;;  %v3390_v23 = vld [vmem:[#allocation12_spill] sm:$0xff] }
 0x1e9   :  { %v1012_v25 = vsel %vm536_vm1, %v888_v5, 0.0  ;;  %v1015_v58 = vsel %vm536_vm1, %v889_v10, 0.0 }
 0x1ea   :  { %v626_v1 = vpop.xlane.xlu1 %625  ;;  %1094 = vadd.xlane.f32.xlu1 %v1093_v11  ;;  %1013 = vadd.xlane.f32.xlu0 %v1012_v25  ;;  %v623_v6 = vpop.xlane.xlu0 %622  ;;  %v2837_v25 = vsub.f32 %v3390_v23, %v793_v62 }
 0x1eb   :  { %v759_v38 = vmul.f32 0.0625, %v626_v1  ;;  %v758_v9 = vmul.f32 0.0625, %v623_v6  ;;  %v3392_v1 = vld [vmem:[#allocation10_spill] sm:$0xff] }
 0x1ec   :  { %3391 = vst [vmem:[#allocation11_spill] sm:$0xff] %v2837_v25  ;;  %v2840_v6 = vsub.f32 %v3392_v1, %v792_v49 }
 0x1ed   :  { %v2826_v30 = vsub.f32 %v3387_v56, %v759_v38  ;;  %v2829_v46 = vsub.f32 %v3388_v41, %v758_v9  ;;  %v3394_v41 = vld [vmem:[#allocation14_spill] sm:$0xff] }
 0x1ee   :  { %v722_v5 = vpop.xlane.xlu1 %721  ;;  %1016 = vadd.xlane.f32.xlu1 %v1015_v58  ;;  %v719_v7 = vpop.xlane.xlu0 %718  ;;  %3393 = vst [vmem:[#allocation12_spill] sm:$0xff] %v2840_v6 }
 0x1ef   :  { %3389 = vst [vmem:[#allocation13_spill] sm:$0xff] %v2829_v46  ;;  %v791_v20 = vmul.f32 0.0625, %v722_v5  ;;  %v790_v27 = vmul.f32 0.0625, %v719_v7  ;;  %v887_v11 = vmul.f32 %v2826_v30, %v2826_v30  ;;  %v886_v59 = vmul.f32 %v2829_v46, %v2829_v46 }
 0x1f1   :  { %v2843_v38 = vsub.f32 %v3394_v41, %v791_v20  ;;  %v2846_v10 = vsub.f32 %v2392_v0, %v790_v27  ;;  %v1009_v7 = vsel %vm536_vm1, %v887_v11, 0.0  ;;  %v1006_v9 = vsel %vm536_vm1, %v886_v59, 0.0 }
 0x1f2   :  { %1010 = vadd.xlane.f32.xlu1 %v1009_v7  ;;  %1007 = vadd.xlane.f32.xlu0 %v1006_v9  ;;  %v921_v0 = vmul.f32 %v2837_v25, %v2837_v25  ;;  %v920_v27 = vmul.f32 %v2840_v6, %v2840_v6 }
 0x1f3   :  { %3395 = vst [vmem:[#allocation10_spill] sm:$0xff] %v2843_v38  ;;  %3396 = vst [vmem:[#allocation14_spill] sm:$0xff] %v2846_v10  ;;  %v919_v56 = vmul.f32 %v2843_v38, %v2843_v38  ;;  %v918_v62 = vmul.f32 %v2846_v10, %v2846_v10 }
 0x1f4   :  { %v1111_v58 = vsel %vm536_vm1, %v921_v0, 0.0  ;;  %v1108_v5 = vsel %vm536_vm1, %v920_v27, 0.0 }
 0x1f5   :  { %v1105_v49 = vsel %vm536_vm1, %v919_v56, 0.0  ;;  %v1102_v20 = vsel %vm536_vm1, %v918_v62, 0.0 }
 0x1f6   :  { %1106 = vadd.xlane.f32.xlu1 %v1105_v49  ;;  %1103 = vadd.xlane.f32.xlu0 %v1102_v20 }
 0x1fa   :  { %1112 = vadd.xlane.f32.xlu1 %v1111_v58  ;;  %1109 = vadd.xlane.f32.xlu0 %v1108_v5 }
 0x207   :  { %v930_v11 = vpop.xlane.xlu0 %929 }
 0x208   :  { %v1116_v59 = vmul.f32 0.0625, %v930_v11 }
 0x20a   :  { %v1180_v23 = vadd.f32 1e-06, %v1116_v59 }
 0x20b   :  { %v933_v1 = vpop.xlane.xlu1 %932  ;;  %v1026_v41 = vpop.xlane.xlu0 %1025 }
 0x20c   :  { %1730 = vrsqrt.f32 %v1180_v23  ;;  %v1117_v7 = vmul.f32 0.0625, %v933_v1  ;;  %v1148_v9 = vmul.f32 0.0625, %v1026_v41  ;;  %v2865_v23 = vld [vmem:[%s3315_s3] ss:$0 sm:$0xff] }
 0x20e   :  { %v1181_v56 = vadd.f32 1e-06, %v1117_v7  ;;  %v1212_v62 = vadd.f32 1e-06, %v1148_v9  ;;  %v2871_v9 = vld [vmem:[%s3316_s4] ss:$0 sm:$0xff] }
 0x20f   :  { %v1029_v25 = vpop.xlane.xlu1 %1028  ;;  %v924_v6 = vpop.xlane.xlu0 %923 }
 0x210   :  { %1732 = vrsqrt.f32 %v1181_v56  ;;  %v1149_v49 = vmul.f32 0.0625, %v1029_v25  ;;  %v1114_v20 = vmul.f32 0.0625, %v924_v6 }
 0x211   :  { %1734 = vrsqrt.f32 %v1212_v62 }
 0x212   :  { %v1213_v0 = vadd.f32 1e-06, %v1149_v49  ;;  %v1178_v27 = vadd.f32 1e-06, %v1114_v20 }
 0x213   :  { %v927_v58 = vpop.xlane.xlu1 %926  ;;  %v1020_v5 = vpop.xlane.xlu0 %1019 }
 0x214   :  { %1736 = vrsqrt.f32 %v1213_v0  ;;  %v1115_v11 = vmul.f32 0.0625, %v927_v58  ;;  %v1146_v59 = vmul.f32 0.0625, %v1020_v5 }
 0x215   :  { %1738 = vrsqrt.f32 %v1178_v27 }
 0x216   :  { %v1731_v10 = vpop.eup %1730  ;;  %v1179_v1 = vadd.f32 1e-06, %v1115_v11  ;;  %v1210_v41 = vadd.f32 1e-06, %v1146_v59  ;;  %v3397_v59 = vld [vmem:[#allocation15_spill] sm:$0xff] }
 0x217   :  { %v1308_v25 = vmul.f32 %v1731_v10, %v2482_v33  ;;  %v1023_v6 = vpop.xlane.xlu1 %1022  ;;  %v942_v7 = vpop.xlane.xlu0 %941 }
 0x218   :  { %1740 = vrsqrt.f32 %v1179_v1  ;;  %v1147_v56 = vmul.f32 0.0625, %v1023_v6  ;;  %v1120_v62 = vmul.f32 0.0625, %v942_v7 }
 0x219   :  { %v1378_v49 = vmul.f32 %v2865_v23, %v1308_v25  ;;  %1742 = vrsqrt.f32 %v1210_v41 }
 0x21a   :  { %v1733_v20 = vpop.eup %1732  ;;  %v1211_v0 = vadd.f32 1e-06, %v1147_v56  ;;  %v1184_v27 = vadd.f32 1e-06, %v1120_v62 }
 0x21b   :  { %v1735_v58 = vpop.eup %1734  ;;  %v1448_v5 = vadd.f32 %v2871_v9, %v1378_v49  ;;  %v1309_v33 = vmul.f32 %v1733_v20, %v2489_v54  ;;  %v945_v10 = vpop.xlane.xlu1 %944 }
 0x21c   :  { %v1038_v11 = vpop.xlane.xlu0 %1037  ;;  %v1340_v38 = vmul.f32 %v1735_v58, %v3397_v59  ;;  %1744 = vrsqrt.f32 %v1211_v0  ;;  %v1121_v46 = vmul.f32 0.0625, %v945_v10 }
 0x21d   :  { %v1152_v1 = vmul.f32 0.0625, %v1038_v11  ;;  %1512 = vst.msk [vmem:[%s3317_s5 + $0x10] sm:$0xff] %vm536_vm1, %v1448_v5  ;;  %v1379_v41 = vmul.f32 %v2865_v23, %v1309_v33  ;;  %1746 = vrsqrt.f32 %v1184_v27 }
 0x21e   :  { %v1737_v25 = vpop.eup %1736  ;;  %v1410_v6 = vmul.f32 %v2865_v23, %v1340_v38  ;;  %v1185_v7 = vadd.f32 1e-06, %v1121_v46 }
 0x21f   :  { %v1216_v54 = vadd.f32 1e-06, %v1152_v1  ;;  %v1739_v56 = vpop.eup %1738  ;;  %v1449_v62 = vadd.f32 %v2871_v9, %v1379_v41  ;;  %v1341_v49 = vmul.f32 %v1737_v25, %v2499_v24  ;;  %v1041_v20 = vpop.xlane.xlu1 %1040 }
 0x220   :  { %v936_v0 = vpop.xlane.xlu0 %935  ;;  %v1480_v58 = vadd.f32 %v2871_v9, %v1410_v6  ;;  %v1306_v10 = vmul.f32 %v1739_v56, %v2492_v26  ;;  %1748 = vrsqrt.f32 %v1185_v7  ;;  %v1153_v5 = vmul.f32 0.0625, %v1041_v20  ;;  %v3398_v7 = vld [vmem:[#allocation16_spill] sm:$0xff] }
 0x221   :  { %1513 = vst.msk [vmem:[%s3317_s5 + $0x18] sm:$0xff] %vm536_vm1, %v1449_v62  ;;  %v1411_v46 = vmul.f32 %v2865_v23, %v1341_v49  ;;  %1750 = vrsqrt.f32 %v1216_v54  ;;  %v1118_v38 = vmul.f32 0.0625, %v936_v0 }
 0x222   :  { %v1741_v27 = vpop.eup %1740  ;;  %1544 = vst.msk [vmem:[%s3317_s5 + $0x110] sm:$0xff] %vm536_vm1, %v1480_v58  ;;  %v1376_v24 = vmul.f32 %v2865_v23, %v1306_v10  ;;  %v1217_v26 = vadd.f32 1e-06, %v1153_v5 }
 0x223   :  { %v1743_v33 = vpop.eup %1742  ;;  %v1481_v11 = vadd.f32 %v2871_v9, %v1411_v46  ;;  %v1307_v59 = vmul.f32 %v1741_v27, %v2515_v16  ;;  %v1182_v1 = vadd.f32 1e-06, %v1118_v38  ;;  %v939_v41 = vpop.xlane.xlu1 %938 }
 0x224   :  { %v1032_v25 = vpop.xlane.xlu0 %1031  ;;  %v1446_v6 = vadd.f32 %v2871_v9, %v1376_v24  ;;  %v1338_v54 = vmul.f32 %v1743_v33, %v3398_v7  ;;  %1752 = vrsqrt.f32 %v1217_v26  ;;  %v1119_v56 = vmul.f32 0.0625, %v939_v41 }
 0x225   :  { %1545 = vst.msk [vmem:[%s3317_s5 + $0x118] sm:$0xff] %vm536_vm1, %v1481_v11  ;;  %v1377_v62 = vmul.f32 %v2865_v23, %v1307_v59  ;;  %1754 = vrsqrt.f32 %v1182_v1  ;;  %v1150_v49 = vmul.f32 0.0625, %v1032_v25 }
 0x226   :  { %v1745_v20 = vpop.eup %1744  ;;  %1510 = vst.msk [vmem:[%s3317_s5] sm:$0xff] %vm536_vm1, %v1446_v6  ;;  %v1408_v16 = vmul.f32 %v2865_v23, %v1338_v54  ;;  %v1183_v0 = vadd.f32 1e-06, %v1119_v56 }
 0x227   :  { %v1747_v58 = vpop.eup %1746  ;;  %v1447_v10 = vadd.f32 %v2871_v9, %v1377_v62  ;;  %v1339_v5 = vmul.f32 %v1745_v20, %v2512_v50  ;;  %v1214_v46 = vadd.f32 1e-06, %v1150_v49  ;;  %v1035_v38 = vpop.xlane.xlu1 %1034 }
 0x228   :  { %v954_v27 = vpop.xlane.xlu0 %953  ;;  %v1478_v24 = vadd.f32 %v2871_v9, %v1408_v16  ;;  %v1312_v26 = vmul.f32 %v1747_v58, %v2526_v60  ;;  %1756 = vrsqrt.f32 %v1183_v0  ;;  %v1151_v33 = vmul.f32 0.0625, %v1035_v38 }
 0x229   :  { %1511 = vst.msk [vmem:[%s3317_s5 + $0x8] sm:$0xff] %vm536_vm1, %v1447_v10  ;;  %v1409_v11 = vmul.f32 %v2865_v23, %v1339_v5  ;;  %1758 = vrsqrt.f32 %v1214_v46  ;;  %v1124_v59 = vmul.f32 0.0625, %v954_v27 }
 0x22a   :  { %v1749_v1 = vpop.eup %1748  ;;  %1542 = vst.msk [vmem:[%s3317_s5 + $0x100] sm:$0xff] %vm536_vm1, %v1478_v24  ;;  %v1382_v50 = vmul.f32 %v2865_v23, %v1312_v26  ;;  %v1215_v60 = vadd.f32 1e-06, %v1151_v33 }
 0x22b   :  { %v1751_v41 = vpop.eup %1750  ;;  %v1479_v25 = vadd.f32 %v2871_v9, %v1409_v11  ;;  %v1313_v6 = vmul.f32 %v1749_v1, %v2523_v61  ;;  %v1188_v7 = vadd.f32 1e-06, %v1124_v59  ;;  %v957_v54 = vpop.xlane.xlu1 %956 }
 0x22c   :  { %v1050_v56 = vpop.xlane.xlu0 %1049  ;;  %v1452_v62 = vadd.f32 %v2871_v9, %v1382_v50  ;;  %v1344_v49 = vmul.f32 %v1751_v41, %v2539_v42  ;;  %1760 = vrsqrt.f32 %v1215_v60  ;;  %v1125_v20 = vmul.f32 0.0625, %v957_v54 }
 0x22d   :  { %1543 = vst.msk [vmem:[%s3317_s5 + $0x108] sm:$0xff] %vm536_vm1, %v1479_v25  ;;  %v1383_v16 = vmul.f32 %v2865_v23, %v1313_v6  ;;  %1762 = vrsqrt.f32 %v1188_v7  ;;  %v1156_v0 = vmul.f32 0.0625, %v1050_v56 }
 0x22e   :  { %v1753_v58 = vpop.eup %1752  ;;  %1516 = vst.msk [vmem:[%s3317_s5 + $0x30] sm:$0xff] %vm536_vm1, %v1452_v62  ;;  %v1414_v61 = vmul.f32 %v2865_v23, %v1344_v49  ;;  %v1189_v42 = vadd.f32 1e-06, %v1125_v20 }
 0x22f   :  { %v1755_v10 = vpop.eup %1754  ;;  %v1453_v5 = vadd.f32 %v2871_v9, %v1383_v16  ;;  %v1345_v46 = vmul.f32 %v1753_v58, %v2536_v2  ;;  %v1220_v38 = vadd.f32 1e-06, %v1156_v0  ;;  %v1053_v27 = vpop.xlane.xlu1 %1052 }
 0x230   :  { %v948_v24 = vpop.xlane.xlu0 %947  ;;  %v1484_v26 = vadd.f32 %v2871_v9, %v1414_v61  ;;  %v1310_v33 = vmul.f32 %v1755_v10, %v2550_v12  ;;  %1764 = vrsqrt.f32 %v1189_v42  ;;  %v1157_v11 = vmul.f32 0.0625, %v1053_v27 }
 0x231   :  { %1517 = vst.msk [vmem:[%s3317_s5 + $0x38] sm:$0xff] %vm536_vm1, %v1453_v5  ;;  %v1415_v59 = vmul.f32 %v2865_v23, %v1345_v46  ;;  %1766 = vrsqrt.f32 %v1220_v38  ;;  %v1122_v1 = vmul.f32 0.0625, %v948_v24 }
 0x232   :  { %v1757_v50 = vpop.eup %1756  ;;  %1548 = vst.msk [vmem:[%s3317_s5 + $0x130] sm:$0xff] %vm536_vm1, %v1484_v26  ;;  %v1380_v2 = vmul.f32 %v2865_v23, %v1310_v33  ;;  %v1221_v12 = vadd.f32 1e-06, %v1157_v11 }
 0x233   :  { %v1759_v60 = vpop.eup %1758  ;;  %v1485_v41 = vadd.f32 %v2871_v9, %v1415_v59  ;;  %v1311_v25 = vmul.f32 %v1757_v50, %v2547_v13  ;;  %v1186_v6 = vadd.f32 1e-06, %v1122_v1  ;;  %v951_v7 = vpop.xlane.xlu1 %950 }
 0x234   :  { %v1044_v54 = vpop.xlane.xlu0 %1043  ;;  %v1450_v56 = vadd.f32 %v2871_v9, %v1380_v2  ;;  %v1342_v62 = vmul.f32 %v1759_v60, %v2563_v44  ;;  %1768 = vrsqrt.f32 %v1221_v12  ;;  %v1123_v49 = vmul.f32 0.0625, %v951_v7 }
 0x235   :  { %1549 = vst.msk [vmem:[%s3317_s5 + $0x138] sm:$0xff] %vm536_vm1, %v1485_v41  ;;  %v1381_v20 = vmul.f32 %v2865_v23, %v1311_v25  ;;  %1770 = vrsqrt.f32 %v1186_v6  ;;  %v1154_v16 = vmul.f32 0.0625, %v1044_v54 }
 0x236   :  { %v1761_v0 = vpop.eup %1760  ;;  %1514 = vst.msk [vmem:[%s3317_s5 + $0x20] sm:$0xff] %vm536_vm1, %v1450_v56  ;;  %v1412_v13 = vmul.f32 %v2865_v23, %v1342_v62  ;;  %v1187_v44 = vadd.f32 1e-06, %v1123_v49 }
 0x237   :  { %v1763_v58 = vpop.eup %1762  ;;  %v1451_v61 = vadd.f32 %v2871_v9, %v1381_v20  ;;  %v1343_v42 = vmul.f32 %v1761_v0, %v2560_v18  ;;  %v1218_v10 = vadd.f32 1e-06, %v1154_v16  ;;  %v1047_v5 = vpop.xlane.xlu1 %1046  ;;  %v3399_v20 = vld [vmem:[#allocation17_spill] sm:$0xff] }
 0x238   :  { %v966_v46 = vpop.xlane.xlu0 %965  ;;  %v1482_v38 = vadd.f32 %v2871_v9, %v1412_v13  ;;  %v1316_v27 = vmul.f32 %v1763_v58, %v2574_v28  ;;  %1772 = vrsqrt.f32 %v1187_v44  ;;  %v1155_v24 = vmul.f32 0.0625, %v1047_v5 }
 0x239   :  { %1515 = vst.msk [vmem:[%s3317_s5 + $0x28] sm:$0xff] %vm536_vm1, %v1451_v61  ;;  %v1413_v26 = vmul.f32 %v2865_v23, %v1343_v42  ;;  %1774 = vrsqrt.f32 %v1218_v10  ;;  %v1128_v33 = vmul.f32 0.0625, %v966_v46  ;;  %v3400_v61 = vld [vmem:[#allocation2_spill] sm:$0xff] }
 0x23a   :  { %v1765_v11 = vpop.eup %1764  ;;  %1546 = vst.msk [vmem:[%s3317_s5 + $0x120] sm:$0xff] %vm536_vm1, %v1482_v38  ;;  %v1386_v18 = vmul.f32 %v2865_v23, %v1316_v27  ;;  %v1219_v28 = vadd.f32 1e-06, %v1155_v24 }
 0x23b   :  { %v1767_v59 = vpop.eup %1766  ;;  %v1483_v1 = vadd.f32 %v2871_v9, %v1413_v26  ;;  %v1317_v50 = vmul.f32 %v1765_v11, %v2571_v29  ;;  %v1192_v2 = vadd.f32 1e-06, %v1128_v33  ;;  %v969_v12 = vpop.xlane.xlu1 %968  ;;  %v3401_v11 = vld [vmem:[#allocation18_spill] sm:$0xff] }
 0x23c   :  { %v1062_v60 = vpop.xlane.xlu0 %1061  ;;  %v1456_v41 = vadd.f32 %v2871_v9, %v1386_v18  ;;  %v1348_v25 = vmul.f32 %v1767_v59, %v2587_v39  ;;  %1776 = vrsqrt.f32 %v1219_v28  ;;  %v1129_v6 = vmul.f32 0.0625, %v969_v12 }
 0x23d   :  { %1547 = vst.msk [vmem:[%s3317_s5 + $0x128] sm:$0xff] %vm536_vm1, %v1483_v1  ;;  %v1387_v7 = vmul.f32 %v2865_v23, %v1317_v50  ;;  %1778 = vrsqrt.f32 %v1192_v2  ;;  %v1160_v54 = vmul.f32 0.0625, %v1062_v60  ;;  %v3402_v2 = vld [vmem:[#allocation3_spill] sm:$0xff] }
 0x23e   :  { %v1769_v56 = vpop.eup %1768  ;;  %1520 = vst.msk [vmem:[%s3317_s5 + $0x50] sm:$0xff] %vm536_vm1, %v1456_v41  ;;  %v1418_v29 = vmul.f32 %v2865_v23, %v1348_v25  ;;  %v1193_v39 = vadd.f32 1e-06, %v1129_v6 }
 0x23f   :  { %v1771_v62 = vpop.eup %1770  ;;  %v1457_v49 = vadd.f32 %v2871_v9, %v1387_v7  ;;  %v1349_v16 = vmul.f32 %v1769_v56, %v3399_v20  ;;  %v1224_v0 = vadd.f32 1e-06, %v1160_v54  ;;  %v1065_v13 = vpop.xlane.xlu1 %1064 }
 0x240   :  { %v960_v44 = vpop.xlane.xlu0 %959  ;;  %v1488_v58 = vadd.f32 %v2871_v9, %v1418_v29  ;;  %v1314_v42 = vmul.f32 %v1771_v62, %v3400_v61  ;;  %1780 = vrsqrt.f32 %v1193_v39  ;;  %v1161_v10 = vmul.f32 0.0625, %v1065_v13  ;;  %v3403_v39 = vld [vmem:[#allocation4_spill] sm:$0xff]  ;;  %v3404_v13 = vld [vmem:[#allocation5_spill] sm:$0xff] }
 0x241   :  { %1521 = vst.msk [vmem:[%s3317_s5 + $0x58] sm:$0xff] %vm536_vm1, %v1457_v49  ;;  %v1419_v5 = vmul.f32 %v2865_v23, %v1349_v16  ;;  %1782 = vrsqrt.f32 %v1224_v0  ;;  %v1126_v46 = vmul.f32 0.0625, %v960_v44 }
 0x242   :  { %v1773_v38 = vpop.eup %1772  ;;  %1552 = vst.msk [vmem:[%s3317_s5 + $0x150] sm:$0xff] %vm536_vm1, %v1488_v58  ;;  %v1384_v27 = vmul.f32 %v2865_v23, %v1314_v42  ;;  %v1225_v24 = vadd.f32 1e-06, %v1161_v10 }
 0x243   :  { %v1775_v26 = vpop.eup %1774  ;;  %v1489_v33 = vadd.f32 %v2871_v9, %v1419_v5  ;;  %v1315_v18 = vmul.f32 %v1773_v38, %v3401_v11  ;;  %v1190_v28 = vadd.f32 1e-06, %v1126_v46  ;;  %v963_v59 = vpop.xlane.xlu1 %962 }
 0x244   :  { %v1056_v1 = vpop.xlane.xlu0 %1055  ;;  %v1454_v50 = vadd.f32 %v2871_v9, %v1384_v27  ;;  %v1346_v12 = vmul.f32 %v1775_v26, %v3402_v2  ;;  %1784 = vrsqrt.f32 %v1225_v24  ;;  %v1127_v60 = vmul.f32 0.0625, %v963_v59  ;;  %v3405_v24 = vld [vmem:[#allocation6_spill] sm:$0xff] }
 0x245   :  { %1553 = vst.msk [vmem:[%s3317_s5 + $0x158] sm:$0xff] %vm536_vm1, %v1489_v33  ;;  %v1385_v41 = vmul.f32 %v2865_v23, %v1315_v18  ;;  %1786 = vrsqrt.f32 %v1190_v28  ;;  %v1158_v25 = vmul.f32 0.0625, %v1056_v1 }
 0x246   :  { %v1777_v6 = vpop.eup %1776  ;;  %1518 = vst.msk [vmem:[%s3317_s5 + $0x40] sm:$0xff] %vm536_vm1, %v1454_v50  ;;  %v1416_v7 = vmul.f32 %v2865_v23, %v1346_v12  ;;  %v1191_v54 = vadd.f32 1e-06, %v1127_v60 }
 0x247   :  { %v1779_v56 = vpop.eup %1778  ;;  %v1455_v29 = vadd.f32 %v2871_v9, %v1385_v41  ;;  %v1347_v62 = vmul.f32 %v1777_v6, %v3403_v39  ;;  %v1222_v49 = vadd.f32 1e-06, %v1158_v25  ;;  %v1059_v20 = vpop.xlane.xlu1 %1058 }
 0x248   :  { %v978_v16 = vpop.xlane.xlu0 %977  ;;  %v1486_v0 = vadd.f32 %v2871_v9, %v1416_v7  ;;  %v1320_v44 = vmul.f32 %v1779_v56, %v3404_v13  ;;  %1788 = vrsqrt.f32 %v1191_v54  ;;  %v1159_v58 = vmul.f32 0.0625, %v1059_v20 }
 0x249   :  { %1519 = vst.msk [vmem:[%s3317_s5 + $0x48] sm:$0xff] %vm536_vm1, %v1455_v29  ;;  %v1417_v61 = vmul.f32 %v2865_v23, %v1347_v62  ;;  %1790 = vrsqrt.f32 %v1222_v49  ;;  %v1132_v42 = vmul.f32 0.0625, %v978_v16 }
 0x24a   :  { %v1781_v10 = vpop.eup %1780  ;;  %1550 = vst.msk [vmem:[%s3317_s5 + $0x140] sm:$0xff] %vm536_vm1, %v1486_v0  ;;  %v1390_v5 = vmul.f32 %v2865_v23, %v1320_v44  ;;  %v1223_v46 = vadd.f32 1e-06, %v1159_v58  ;;  %v3406_v44 = vld [vmem:[#allocation8_spill] sm:$0xff] }
 0x24b   :  { %v1783_v38 = vpop.eup %1782  ;;  %v1487_v27 = vadd.f32 %v2871_v9, %v1417_v61  ;;  %v1321_v26 = vmul.f32 %v1781_v10, %v3405_v24  ;;  %v1196_v33 = vadd.f32 1e-06, %v1132_v42  ;;  %v981_v11 = vpop.xlane.xlu1 %980 }
 0x24c   :  { %v1074_v18 = vpop.xlane.xlu0 %1073  ;;  %v1460_v28 = vadd.f32 %v2871_v9, %v1390_v5  ;;  %v1352_v59 = vmul.f32 %v1783_v38, %v2635_v48  ;;  %1792 = vrsqrt.f32 %v1223_v46  ;;  %v1133_v1 = vmul.f32 0.0625, %v981_v11 }
 0x24d   :  { %1551 = vst.msk [vmem:[%s3317_s5 + $0x148] sm:$0xff] %vm536_vm1, %v1487_v27  ;;  %v1391_v50 = vmul.f32 %v2865_v23, %v1321_v26  ;;  %1794 = vrsqrt.f32 %v1196_v33  ;;  %v1164_v2 = vmul.f32 0.0625, %v1074_v18 }
 0x24e   :  { %v1785_v12 = vpop.eup %1784  ;;  %1524 = vst.msk [vmem:[%s3317_s5 + $0x70] sm:$0xff] %vm536_vm1, %v1460_v28  ;;  %v1422_v60 = vmul.f32 %v2865_v23, %v1352_v59  ;;  %v1197_v48 = vadd.f32 1e-06, %v1133_v1 }
 0x24f   :  { %v1787_v41 = vpop.eup %1786  ;;  %v1461_v25 = vadd.f32 %v2871_v9, %v1391_v50  ;;  %v1353_v6 = vmul.f32 %v1785_v12, %v2632_v34  ;;  %v1228_v7 = vadd.f32 1e-06, %v1164_v2  ;;  %v1077_v54 = vpop.xlane.xlu1 %1076 }
 0x250   :  { %v972_v56 = vpop.xlane.xlu0 %971  ;;  %v1492_v29 = vadd.f32 %v2871_v9, %v1422_v60  ;;  %v1318_v39 = vmul.f32 %v1787_v41, %v2646_v19  ;;  %1796 = vrsqrt.f32 %v1197_v48  ;;  %v1165_v62 = vmul.f32 0.0625, %v1077_v54 }
 0x251   :  { %1525 = vst.msk [vmem:[%s3317_s5 + $0x78] sm:$0xff] %vm536_vm1, %v1461_v25  ;;  %v1423_v49 = vmul.f32 %v2865_v23, %v1353_v6  ;;  %1798 = vrsqrt.f32 %v1228_v7  ;;  %v1130_v20 = vmul.f32 0.0625, %v972_v56 }
 0x252   :  { %v1789_v16 = vpop.eup %1788  ;;  %1556 = vst.msk [vmem:[%s3317_s5 + $0x170] sm:$0xff] %vm536_vm1, %v1492_v29  ;;  %v1388_v34 = vmul.f32 %v2865_v23, %v1318_v39  ;;  %v1229_v19 = vadd.f32 1e-06, %v1165_v62 }
 0x253   :  { %v1791_v0 = vpop.eup %1790  ;;  %v1493_v13 = vadd.f32 %v2871_v9, %v1423_v49  ;;  %v1319_v58 = vmul.f32 %v1789_v16, %v3406_v44  ;;  %v1194_v61 = vadd.f32 1e-06, %v1130_v20  ;;  %v975_v42 = vpop.xlane.xlu1 %974 }
 0x254   :  { %v1068_v10 = vpop.xlane.xlu0 %1067  ;;  %v1458_v5 = vadd.f32 %v2871_v9, %v1388_v34  ;;  %v1350_v46 = vmul.f32 %v1791_v0, %v2659_v45  ;;  %1800 = vrsqrt.f32 %v1229_v19  ;;  %v1131_v38 = vmul.f32 0.0625, %v975_v42 }
 0x255   :  { %1557 = vst.msk [vmem:[%s3317_s5 + $0x178] sm:$0xff] %vm536_vm1, %v1493_v13  ;;  %v1389_v27 = vmul.f32 %v2865_v23, %v1319_v58  ;;  %1802 = vrsqrt.f32 %v1194_v61  ;;  %v1162_v24 = vmul.f32 0.0625, %v1068_v10 }
 0x256   :  { %v1793_v26 = vpop.eup %1792  ;;  %1522 = vst.msk [vmem:[%s3317_s5 + $0x60] sm:$0xff] %vm536_vm1, %v1458_v5  ;;  %v1420_v33 = vmul.f32 %v2865_v23, %v1350_v46  ;;  %v1195_v45 = vadd.f32 1e-06, %v1131_v38 }
 0x257   :  { %v1795_v11 = vpop.eup %1794  ;;  %v1459_v18 = vadd.f32 %v2871_v9, %v1389_v27  ;;  %v1351_v28 = vmul.f32 %v1793_v26, %v2656_v21  ;;  %v1226_v59 = vadd.f32 1e-06, %v1162_v24  ;;  %v1071_v1 = vpop.xlane.xlu1 %1070 }
 0x258   :  { %v990_v50 = vpop.xlane.xlu0 %989  ;;  %v1490_v2 = vadd.f32 %v2871_v9, %v1420_v33  ;;  %v1324_v12 = vmul.f32 %v1795_v11, %v2670_v32  ;;  %1804 = vrsqrt.f32 %v1195_v45  ;;  %v1163_v60 = vmul.f32 0.0625, %v1071_v1 }
 0x259   :  { %1523 = vst.msk [vmem:[%s3317_s5 + $0x68] sm:$0xff] %vm536_vm1, %v1459_v18  ;;  %v1421_v48 = vmul.f32 %v2865_v23, %v1351_v28  ;;  %1806 = vrsqrt.f32 %v1226_v59  ;;  %v1136_v41 = vmul.f32 0.0625, %v990_v50 }
 0x25a   :  { %v1797_v25 = vpop.eup %1796  ;;  %1554 = vst.msk [vmem:[%s3317_s5 + $0x160] sm:$0xff] %vm536_vm1, %v1490_v2  ;;  %v1394_v21 = vmul.f32 %v2865_v23, %v1324_v12  ;;  %v1227_v32 = vadd.f32 1e-06, %v1163_v60 }
 0x25b   :  { %v1799_v6 = vpop.eup %1798  ;;  %v1491_v7 = vadd.f32 %v2871_v9, %v1421_v48  ;;  %v1325_v54 = vmul.f32 %v1797_v25, %v2667_v37  ;;  %v1200_v56 = vadd.f32 1e-06, %v1136_v41  ;;  %v993_v29 = vpop.xlane.xlu1 %992 }
 0x25c   :  { %v1086_v39 = vpop.xlane.xlu0 %1085  ;;  %v1464_v62 = vadd.f32 %v2871_v9, %v1394_v21  ;;  %v1356_v49 = vmul.f32 %v1799_v6, %v2683_v3  ;;  %1808 = vrsqrt.f32 %v1227_v32  ;;  %v1137_v20 = vmul.f32 0.0625, %v993_v29 }
 0x25d   :  { %1555 = vst.msk [vmem:[%s3317_s5 + $0x168] sm:$0xff] %vm536_vm1, %v1491_v7  ;;  %v1395_v16 = vmul.f32 %v2865_v23, %v1325_v54  ;;  %1810 = vrsqrt.f32 %v1200_v56  ;;  %v1168_v34 = vmul.f32 0.0625, %v1086_v39 }
 0x25e   :  { %v1801_v19 = vpop.eup %1800  ;;  %1528 = vst.msk [vmem:[%s3317_s5 + $0x90] sm:$0xff] %vm536_vm1, %v1464_v62  ;;  %v1426_v37 = vmul.f32 %v2865_v23, %v1356_v49  ;;  %v1201_v3 = vadd.f32 1e-06, %v1137_v20 }
 0x25f   :  { %v1803_v0 = vpop.eup %1802  ;;  %v1465_v13 = vadd.f32 %v2871_v9, %v1395_v16  ;;  %v1357_v44 = vmul.f32 %v1801_v19, %v2680_v43  ;;  %v1232_v58 = vadd.f32 1e-06, %v1168_v34  ;;  %v1089_v61 = vpop.xlane.xlu1 %1088 }
 0x260   :  { %v984_v42 = vpop.xlane.xlu0 %983  ;;  %v1496_v10 = vadd.f32 %v2871_v9, %v1426_v37  ;;  %v1322_v5 = vmul.f32 %v1803_v0, %v2694_v47  ;;  %1812 = vrsqrt.f32 %v1201_v3  ;;  %v1169_v46 = vmul.f32 0.0625, %v1089_v61 }
 0x261   :  { %1529 = vst.msk [vmem:[%s3317_s5 + $0x98] sm:$0xff] %vm536_vm1, %v1465_v13  ;;  %v1427_v38 = vmul.f32 %v2865_v23, %v1357_v44  ;;  %1814 = vrsqrt.f32 %v1232_v58  ;;  %v1134_v27 = vmul.f32 0.0625, %v984_v42 }
 0x262   :  { %v1805_v24 = vpop.eup %1804  ;;  %1560 = vst.msk [vmem:[%s3317_s5 + $0x190] sm:$0xff] %vm536_vm1, %v1496_v10  ;;  %v1392_v43 = vmul.f32 %v2865_v23, %v1322_v5  ;;  %v1233_v47 = vadd.f32 1e-06, %v1169_v46 }
 0x263   :  { %v1807_v26 = vpop.eup %1806  ;;  %v1497_v33 = vadd.f32 %v2871_v9, %v1427_v38  ;;  %v1323_v45 = vmul.f32 %v1805_v24, %v2691_v63  ;;  %v1198_v11 = vadd.f32 1e-06, %v1134_v27  ;;  %v987_v18 = vpop.xlane.xlu1 %986 }
 0x264   :  { %v1080_v28 = vpop.xlane.xlu0 %1079  ;;  %v1462_v59 = vadd.f32 %v2871_v9, %v1392_v43  ;;  %v1354_v1 = vmul.f32 %v1807_v26, %v2707_v36  ;;  %1816 = vrsqrt.f32 %v1233_v47  ;;  %v1135_v50 = vmul.f32 0.0625, %v987_v18 }
 0x265   :  { %1561 = vst.msk [vmem:[%s3317_s5 + $0x198] sm:$0xff] %vm536_vm1, %v1497_v33  ;;  %v1393_v2 = vmul.f32 %v2865_v23, %v1323_v45  ;;  %1818 = vrsqrt.f32 %v1198_v11  ;;  %v1166_v12 = vmul.f32 0.0625, %v1080_v28 }
 0x266   :  { %v1809_v60 = vpop.eup %1808  ;;  %1526 = vst.msk [vmem:[%s3317_s5 + $0x80] sm:$0xff] %vm536_vm1, %v1462_v59  ;;  %v1424_v63 = vmul.f32 %v2865_v23, %v1354_v1  ;;  %v1199_v36 = vadd.f32 1e-06, %v1135_v50 }
 0x267   :  { %v1811_v48 = vpop.eup %1810  ;;  %v1463_v41 = vadd.f32 %v2871_v9, %v1393_v2  ;;  %v1355_v25 = vmul.f32 %v1809_v60, %v2704_v53  ;;  %v1230_v21 = vadd.f32 1e-06, %v1166_v12  ;;  %v1083_v32 = vpop.xlane.xlu1 %1082 }
 0x268   :  { %v1002_v6 = vpop.xlane.xlu0 %1001  ;;  %v1494_v7 = vadd.f32 %v2871_v9, %v1424_v63  ;;  %v1328_v54 = vmul.f32 %v1811_v48, %v2718_v55  ;;  %1820 = vrsqrt.f32 %v1199_v36  ;;  %v1167_v56 = vmul.f32 0.0625, %v1083_v32 }
 0x269   :  { %1527 = vst.msk [vmem:[%s3317_s5 + $0x88] sm:$0xff] %vm536_vm1, %v1463_v41  ;;  %v1425_v29 = vmul.f32 %v2865_v23, %v1355_v25  ;;  %1822 = vrsqrt.f32 %v1230_v21  ;;  %v1140_v39 = vmul.f32 0.0625, %v1002_v6 }
 0x26a   :  { %v1813_v62 = vpop.eup %1812  ;;  %1558 = vst.msk [vmem:[%s3317_s5 + $0x180] sm:$0xff] %vm536_vm1, %v1494_v7  ;;  %v1398_v53 = vmul.f32 %v2865_v23, %v1328_v54  ;;  %v1231_v55 = vadd.f32 1e-06, %v1167_v56 }
 0x26b   :  { %v1815_v49 = vpop.eup %1814  ;;  %v1495_v20 = vadd.f32 %v2871_v9, %v1425_v29  ;;  %v1329_v16 = vmul.f32 %v1813_v62, %v2715_v4  ;;  %v1204_v34 = vadd.f32 1e-06, %v1140_v39  ;;  %v1005_v19 = vpop.xlane.xlu1 %1004 }
 0x26c   :  { %v1098_v37 = vpop.xlane.xlu0 %1097  ;;  %v1468_v3 = vadd.f32 %v2871_v9, %v1398_v53  ;;  %v1360_v0 = vmul.f32 %v1815_v49, %v2731_v51  ;;  %1824 = vrsqrt.f32 %v1231_v55  ;;  %v1141_v13 = vmul.f32 0.0625, %v1005_v19 }
 0x26d   :  { %1559 = vst.msk [vmem:[%s3317_s5 + $0x188] sm:$0xff] %vm536_vm1, %v1495_v20  ;;  %v1399_v44 = vmul.f32 %v2865_v23, %v1329_v16  ;;  %1826 = vrsqrt.f32 %v1204_v34  ;;  %v1172_v58 = vmul.f32 0.0625, %v1098_v37 }
 0x26e   :  { %v1817_v61 = vpop.eup %1816  ;;  %1532 = vst.msk [vmem:[%s3317_s5 + $0xb0] sm:$0xff] %vm536_vm1, %v1468_v3  ;;  %v1430_v4 = vmul.f32 %v2865_v23, %v1360_v0  ;;  %v1205_v51 = vadd.f32 1e-06, %v1141_v13 }
 0x26f   :  { %v1819_v42 = vpop.eup %1818  ;;  %v1469_v10 = vadd.f32 %v2871_v9, %v1399_v44  ;;  %v1361_v5 = vmul.f32 %v1817_v61, %v2728_v15  ;;  %v1236_v46 = vadd.f32 1e-06, %v1172_v58  ;;  %v1101_v38 = vpop.xlane.xlu1 %1100 }
 0x270   :  { %v996_v27 = vpop.xlane.xlu0 %995  ;;  %v1500_v24 = vadd.f32 %v2871_v9, %v1430_v4  ;;  %v1326_v43 = vmul.f32 %v1819_v42, %v2742_v8  ;;  %1828 = vrsqrt.f32 %v1205_v51  ;;  %v1173_v47 = vmul.f32 0.0625, %v1101_v38 }
 0x271   :  { %1533 = vst.msk [vmem:[%s3317_s5 + $0xb8] sm:$0xff] %vm536_vm1, %v1469_v10  ;;  %v1431_v26 = vmul.f32 %v2865_v23, %v1361_v5  ;;  %1830 = vrsqrt.f32 %v1236_v46  ;;  %v1138_v33 = vmul.f32 0.0625, %v996_v27 }
 0x272   :  { %v1821_v45 = vpop.eup %1820  ;;  %1564 = vst.msk [vmem:[%s3317_s5 + $0x1b0] sm:$0xff] %vm536_vm1, %v1500_v24  ;;  %v1396_v15 = vmul.f32 %v2865_v23, %v1326_v43  ;;  %v1237_v8 = vadd.f32 1e-06, %v1173_v47  ;;  %v3407_v47 = vld [vmem:[#allocation7_spill] sm:$0xff] }
 0x273   :  { %v1823_v11 = vpop.eup %1822  ;;  %v1501_v18 = vadd.f32 %v2871_v9, %v1431_v26  ;;  %v1327_v28 = vmul.f32 %v1821_v45, %v2739_v17  ;;  %v1202_v59 = vadd.f32 1e-06, %v1138_v33  ;;  %v999_v1 = vpop.xlane.xlu1 %998 }
 0x274   :  { %v1092_v50 = vpop.xlane.xlu0 %1091  ;;  %v1466_v2 = vadd.f32 %v2871_v9, %v1396_v15  ;;  %v1358_v12 = vmul.f32 %v1823_v11, %v2755_v52  ;;  %1832 = vrsqrt.f32 %v1237_v8  ;;  %v1139_v60 = vmul.f32 0.0625, %v999_v1  ;;  %v3408_v11 = vld [vmem:[#allocation19_spill] sm:$0xff] }
 0x275   :  { %1565 = vst.msk [vmem:[%s3317_s5 + $0x1b8] sm:$0xff] %vm536_vm1, %v1501_v18  ;;  %v1397_v63 = vmul.f32 %v2865_v23, %v1327_v28  ;;  %1834 = vrsqrt.f32 %v1202_v59  ;;  %v1170_v36 = vmul.f32 0.0625, %v1092_v50 }
 0x276   :  { %v1825_v48 = vpop.eup %1824  ;;  %1530 = vst.msk [vmem:[%s3317_s5 + $0xa0] sm:$0xff] %vm536_vm1, %v1466_v2  ;;  %v1428_v17 = vmul.f32 %v2865_v23, %v1358_v12  ;;  %v1203_v52 = vadd.f32 1e-06, %v1139_v60 }
 0x277   :  { %v1827_v41 = vpop.eup %1826  ;;  %v1467_v25 = vadd.f32 %v2871_v9, %v1397_v63  ;;  %v1359_v21 = vmul.f32 %v1825_v48, %v2752_v31  ;;  %v1234_v32 = vadd.f32 1e-06, %v1170_v36  ;;  %v1095_v6 = vpop.xlane.xlu1 %1094  ;;  %v3409_v36 = vld [vmem:[#allocation9_spill] sm:$0xff] }
 0x278   :  { %v1014_v7 = vpop.xlane.xlu0 %1013  ;;  %v1498_v54 = vadd.f32 %v2871_v9, %v1428_v17  ;;  %v1332_v56 = vmul.f32 %v1827_v41, %v2766_v40  ;;  %1836 = vrsqrt.f32 %v1203_v52  ;;  %v1171_v29 = vmul.f32 0.0625, %v1095_v6 }
 0x279   :  { %1531 = vst.msk [vmem:[%s3317_s5 + $0xa8] sm:$0xff] %vm536_vm1, %v1467_v25  ;;  %v1429_v39 = vmul.f32 %v2865_v23, %v1359_v21  ;;  %1838 = vrsqrt.f32 %v1234_v32  ;;  %v1144_v62 = vmul.f32 0.0625, %v1014_v7  ;;  %v3410_v21 = vld [vmem:[#allocation21_spill] sm:$0xff] }
 0x27a   :  { %v1829_v53 = vpop.eup %1828  ;;  %1562 = vst.msk [vmem:[%s3317_s5 + $0x1a0] sm:$0xff] %vm536_vm1, %v1498_v54  ;;  %v1402_v31 = vmul.f32 %v2865_v23, %v1332_v56  ;;  %v1235_v40 = vadd.f32 1e-06, %v1171_v29 }
 0x27b   :  { %v1831_v55 = vpop.eup %1830  ;;  %v1499_v49 = vadd.f32 %v2871_v9, %v1429_v39  ;;  %v1333_v20 = vmul.f32 %v1829_v53, %v2763_v57  ;;  %v1208_v16 = vadd.f32 1e-06, %v1144_v62  ;;  %v1017_v34 = vpop.xlane.xlu1 %1016  ;;  %v3411_v53 = vld [vmem:[#allocation20_spill] sm:$0xff] }
 0x27c   :  { %v1472_v19 = vadd.f32 %v2871_v9, %v1402_v31  ;;  %v1364_v37 = vmul.f32 %v1831_v55, %v2779_v35  ;;  %1840 = vrsqrt.f32 %v1235_v40  ;;  %v1145_v3 = vmul.f32 0.0625, %v1017_v34 }
 0x27d   :  { %1563 = vst.msk [vmem:[%s3317_s5 + $0x1a8] sm:$0xff] %vm536_vm1, %v1499_v49  ;;  %v1403_v0 = vmul.f32 %v2865_v23, %v1333_v20  ;;  %1842 = vrsqrt.f32 %v1208_v16  ;;  %v1858_v49 = vld [vmem:[%s3315_s3] ss:$0 sm:$0xff] }
 0x27e   :  { %v1833_v13 = vpop.eup %1832  ;;  %1536 = vst.msk [vmem:[%s3317_s5 + $0xd0] sm:$0xff] %vm536_vm1, %v1472_v19  ;;  %v1434_v57 = vmul.f32 %v2865_v23, %v1364_v37  ;;  %v1209_v44 = vadd.f32 1e-06, %v1145_v3  ;;  %v3412_v37 = vld [vmem:[#allocation13_spill] sm:$0xff] }
 0x27f   :  { %v1835_v35 = vpop.eup %1834  ;;  %v1473_v58 = vadd.f32 %v2871_v9, %v1403_v0  ;;  %v1365_v61 = vmul.f32 %v1833_v13, %v2776_v14  ;;  %v1011_v4 = vpop.xlane.xlu1 %1010 }
 0x280   :  { %v1008_v51 = vpop.xlane.xlu0 %1007  ;;  %v1504_v42 = vadd.f32 %v2871_v9, %v1434_v57  ;;  %v1330_v10 = vmul.f32 %v1835_v35, %v2790_v22  ;;  %1844 = vrsqrt.f32 %v1209_v44  ;;  %v1143_v5 = vmul.f32 0.0625, %v1011_v4 }
 0x281   :  { %1537 = vst.msk [vmem:[%s3317_s5 + $0xd8] sm:$0xff] %vm536_vm1, %v1473_v58  ;;  %v1435_v46 = vmul.f32 %v2865_v23, %v1365_v61  ;;  %v1142_v38 = vmul.f32 0.0625, %v1008_v51  ;;  %v3413_v58 = vld [vmem:[#allocation10_spill] sm:$0xff] }
 0x282   :  { %v1837_v27 = vpop.eup %1836  ;;  %1568 = vst.msk [vmem:[%s3317_s5 + $0x1d0] sm:$0xff] %vm536_vm1, %v1504_v42  ;;  %v1400_v14 = vmul.f32 %v2865_v23, %v1330_v10  ;;  %v1207_v24 = vadd.f32 1e-06, %v1143_v5  ;;  %v3414_v51 = vld [vmem:[#allocation14_spill] sm:$0xff] }
 0x283   :  { %v1839_v22 = vpop.eup %1838  ;;  %v1505_v43 = vadd.f32 %v2871_v9, %v1435_v46  ;;  %v1331_v26 = vmul.f32 %v1837_v27, %v3407_v47  ;;  %v1206_v33 = vadd.f32 1e-06, %v1142_v38  ;;  %v1107_v45 = vpop.xlane.xlu1 %1106  ;;  %v3415_v27 = vld [vmem:[#allocation11_spill] sm:$0xff] }
 0x284   :  { %v1104_v15 = vpop.xlane.xlu0 %1103  ;;  %v1470_v8 = vadd.f32 %v2871_v9, %v1400_v14  ;;  %v1362_v18 = vmul.f32 %v1839_v22, %v3408_v11  ;;  %1846 = vrsqrt.f32 %v1207_v24  ;;  %v1175_v28 = vmul.f32 0.0625, %v1107_v45  ;;  %v3416_v22 = vld [vmem:[#allocation12_spill] sm:$0xff] }
 0x285   :  { %1569 = vst.msk [vmem:[%s3317_s5 + $0x1d8] sm:$0xff] %vm536_vm1, %v1505_v43  ;;  %v1401_v59 = vmul.f32 %v2865_v23, %v1331_v26  ;;  %1848 = vrsqrt.f32 %v1206_v33  ;;  %v1174_v1 = vmul.f32 0.0625, %v1104_v15 }
 0x286   :  { %v1841_v50 = vpop.eup %1840  ;;  %1534 = vst.msk [vmem:[%s3317_s5 + $0xc0] sm:$0xff] %vm536_vm1, %v1470_v8  ;;  %v1432_v2 = vmul.f32 %v2865_v23, %v1362_v18  ;;  %v1239_v12 = vadd.f32 1e-06, %v1175_v28 }
 0x287   :  { %v1843_v60 = vpop.eup %1842  ;;  %v1471_v63 = vadd.f32 %v2871_v9, %v1401_v59  ;;  %v1363_v48 = vmul.f32 %v1841_v50, %v3409_v36  ;;  %v1238_v17 = vadd.f32 1e-06, %v1174_v1  ;;  %v1113_v52 = vpop.xlane.xlu1 %1112 }
 0x288   :  { %v1110_v41 = vpop.xlane.xlu0 %1109  ;;  %v1502_v25 = vadd.f32 %v2871_v9, %v1432_v2  ;;  %v1336_v32 = vmul.f32 %v1843_v60, %v3410_v21  ;;  %1850 = vrsqrt.f32 %v1239_v12  ;;  %v1177_v6 = vmul.f32 0.0625, %v1113_v52 }
 0x289   :  { %1535 = vst.msk [vmem:[%s3317_s5 + $0xc8] sm:$0xff] %vm536_vm1, %v1471_v63  ;;  %v1433_v7 = vmul.f32 %v2865_v23, %v1363_v48  ;;  %1852 = vrsqrt.f32 %v1238_v17  ;;  %v1176_v54 = vmul.f32 0.0625, %v1110_v41 }
 0x28a   :  { %v1845_v56 = vpop.eup %1844  ;;  %1566 = vst.msk [vmem:[%s3317_s5 + $0x1c0] sm:$0xff] %vm536_vm1, %v1502_v25  ;;  %v1406_v29 = vmul.f32 %v2865_v23, %v1336_v32  ;;  %v1241_v39 = vadd.f32 1e-06, %v1177_v6 }
 0x28b   :  { %v1503_v62 = vadd.f32 %v2871_v9, %v1433_v7  ;;  %v1337_v31 = vmul.f32 %v1845_v56, %v3411_v53  ;;  %v1240_v40 = vadd.f32 1e-06, %v1176_v54 }
 0x28c   :  { %v1476_v55 = vadd.f32 %v2871_v9, %v1406_v29  ;;  %1854 = vrsqrt.f32 %v1241_v39  ;;  %v1859_v9 = vld [vmem:[%s3316_s4] ss:$0 sm:$0xff] }
 0x28d   :  { %1567 = vst.msk [vmem:[%s3317_s5 + $0x1c8] sm:$0xff] %vm536_vm1, %v1503_v62  ;;  %v1407_v20 = vmul.f32 %v1858_v49, %v1337_v31  ;;  %1856 = vrsqrt.f32 %v1240_v40 }
 0x28e   :  { %v1847_v23 = vpop.eup %1846  ;;  %1540 = vst.msk [vmem:[%s3317_s5 + $0xf0] sm:$0xff] %vm536_vm1, %v1476_v55 }
 0x28f   :  { %v1849_v16 = vpop.eup %1848  ;;  %v1477_v34 = vadd.f32 %v1859_v9, %v1407_v20  ;;  %v1335_v19 = vmul.f32 %v1847_v23, %v2826_v30 }
 0x290   :  { %v1334_v3 = vmul.f32 %v1849_v16, %v3412_v37 }
 0x291   :  { %1541 = vst.msk [vmem:[%s3317_s5 + $0xf8] sm:$0xff] %vm536_vm1, %v1477_v34  ;;  %v1405_v0 = vmul.f32 %v1858_v49, %v1335_v19 }
 0x292   :  { %v1851_v13 = vpop.eup %1850  ;;  %v1404_v57 = vmul.f32 %v1858_v49, %v1334_v3 }
 0x293   :  { %v1853_v44 = vpop.eup %1852  ;;  %v1475_v35 = vadd.f32 %v1859_v9, %v1405_v0  ;;  %v1367_v61 = vmul.f32 %v1851_v13, %v3413_v58 }
 0x294   :  { %v1474_v4 = vadd.f32 %v1859_v9, %v1404_v57  ;;  %v1366_v42 = vmul.f32 %v1853_v44, %v3414_v51 }
 0x295   :  { %1539 = vst.msk [vmem:[%s3317_s5 + $0xe8] sm:$0xff] %vm536_vm1, %v1475_v35  ;;  %v1437_v30 = vmul.f32 %v1858_v49, %v1367_v61 }
 0x296   :  { %v1855_v10 = vpop.eup %1854  ;;  %1538 = vst.msk [vmem:[%s3317_s5 + $0xe0] sm:$0xff] %vm536_vm1, %v1474_v4  ;;  %v1436_v5 = vmul.f32 %v1858_v49, %v1366_v42 }
 0x297   :  { %v1857_v46 = vpop.eup %1856  ;;  %v1507_v38 = vadd.f32 %v1859_v9, %v1437_v30  ;;  %v1369_v14 = vmul.f32 %v1855_v10, %v3415_v27 }
 0x298   :  { %v1506_v24 = vadd.f32 %v1859_v9, %v1436_v5  ;;  %v1368_v43 = vmul.f32 %v1857_v46, %v3416_v22 }
 0x299   :  { %1571 = vst.msk [vmem:[%s3317_s5 + $0x1e8] sm:$0xff] %vm536_vm1, %v1507_v38  ;;  %v1439_v47 = vmul.f32 %v1858_v49, %v1369_v14 }
 0x29a   :  { %1570 = vst.msk [vmem:[%s3317_s5 + $0x1e0] sm:$0xff] %vm536_vm1, %v1506_v24  ;;  %v1438_v26 = vmul.f32 %v1858_v49, %v1368_v43 }
 0x29b   :  { %v1509_v33 = vadd.f32 %v1859_v9, %v1439_v47 }
 0x29c   :  { %v1508_v45 = vadd.f32 %v1859_v9, %v1438_v26 }
 0x29d   :  { %1573 = vst.msk [vmem:[%s3317_s5 + $0x1f8] sm:$0xff] %vm536_vm1, %v1509_v33 }
 0x29e   :  { %1572 = vst.msk [vmem:[%s3317_s5 + $0x1f0] sm:$0xff] %vm536_vm1, %v1508_v45 }

</bundles_post_ra>
